<compile_context>
chip_gen: v5e
topology: v5e:2x2
jax: 0.10.0
libtpu: 0.0.40
codegen_flags: <defaults>
</compile_context>

<pallas_src>
import functools

import jax
import jax.numpy as jnp
from jax.experimental import pallas as pl
from jax.experimental.pallas import tpu as pltpu

EPS = 1e-5


def _round_up(x, m):
    return (x + m - 1) // m * m


# ----------------------------- fused kernel -----------------------------

def _fused_kernel(x_ref, w1_ref, b1_ref, w2_ref, b2_ref, w3_ref, b3_ref,
                  o_ref, xp_ref, *, H, W, Ho, Wo, stride, add_residual):
    """expand(1x1)+BN+ReLU6 -> depthwise(3x3,pad=1)+BN+ReLU6 -> project(1x1)+BN(+res)."""
    f32 = jnp.float32
    Cexp = w1_ref.shape[1]
    Hp, Wp, _ = xp_ref.shape

    # ---- stage 1: 1x1 expand conv (bf16 MXU, f32 acc; BN scale pre-folded) + ReLU6 ----
    y = jnp.dot(x_ref[0], w1_ref[...], preferred_element_type=f32)   # (H*W, Cexp)
    y = y + b1_ref[...]
    y = jnp.minimum(jnp.maximum(y, 0.0), 6.0)

    # Expanded activation stays in VMEM scratch; zero *border only* implements pad=1
    # (interior is fully overwritten below, every grid step).
    xp_ref[0:1, :, :] = jnp.zeros((1, Wp, Cexp), f32)
    xp_ref[H + 1:Hp, :, :] = jnp.zeros((Hp - H - 1, Wp, Cexp), f32)
    xp_ref[:, 0:1, :] = jnp.zeros((Hp, 1, Cexp), f32)
    xp_ref[:, W + 1:Wp, :] = jnp.zeros((Hp, Wp - W - 1, Cexp), f32)
    xp_ref[1:H + 1, 1:W + 1, :] = y.reshape(H, W, Cexp)

    # ---- stage 2: 3x3 depthwise conv (BN scale folded into taps) + ReLU6 ----
    acc = jnp.zeros((Ho, Wo, Cexp), f32)
    if stride == 1:
        for ki in range(3):
            for kj in range(3):
                acc = acc + xp_ref[ki:ki + Ho, kj:kj + Wo, :] * w2_ref[ki, kj]
    else:
        # Subsample once into compact even/odd parity planes, then slice per tap.
        xpv = xp_ref[...]
        sub = {}
        for a in range(2):
            for b in range(2):
                sub[(a, b)] = jax.lax.slice(
                    xpv, (a, b, 0),
                    (a + 2 * Ho + 1, b + 2 * Wo + 1, Cexp),
                    (2, 2, 1))                       # (Ho+1, Wo+1, Cexp)
        for ki in range(3):
            for kj in range(3):
                s = sub[(ki % 2, kj % 2)]
                win = s[ki // 2:ki // 2 + Ho, kj // 2:kj // 2 + Wo, :]
                acc = acc + win * w2_ref[ki, kj]
    z = acc + b2_ref[0]
    z = jnp.minimum(jnp.maximum(z, 0.0), 6.0)

    # ---- stage 3: 1x1 project conv (bf16 MXU, f32 acc) (+ residual) ----
    out = jnp.dot(z.reshape(Ho * Wo, Cexp).astype(jnp.bfloat16), w3_ref[...],
                  preferred_element_type=f32)
    out = out + b3_ref[...]
    if add_residual:
        # Re-read x here (cheap vld) instead of keeping it live across stage 2.
        out = out + x_ref[0].astype(f32)   # Cin_p == Cout_p, H*W == Ho*Wo when active
    o_ref[0] = out


# ----------------------------- parameters & forward -----------------------------

def _bn_fold(conv_bias, gamma, beta, mean, var):
    scale = gamma / jnp.sqrt(var + EPS)
    shift = (conv_bias - mean) * scale + beta
    return scale, shift


def init_params(key, in_channels, out_channels, t):
    cexp = in_channels * t
    ks = jax.random.split(key, 18)

    def u(k, shape, lo=-0.5, hi=0.5):
        return jax.random.uniform(k, shape, jnp.float32, lo, hi)

    return {
        # expand 1x1 conv (stored as (Cin, Cexp) for channels-last matmul)
        "w1": u(ks[0], (in_channels, cexp)),
        "b1": u(ks[1], (cexp,)),
        "bn1_gamma": u(ks[2], (cexp,), 0.5, 1.5),
        "bn1_beta": u(ks[3], (cexp,)),
        "bn1_mean": u(ks[4], (cexp,)),
        "bn1_var": u(ks[5], (cexp,), 0.5, 1.5),
        # depthwise 3x3 conv (stored as (3, 3, Cexp))
        "w2": u(ks[6], (3, 3, cexp)),
        "b2": u(ks[7], (cexp,)),
        "bn2_gamma": u(ks[8], (cexp,), 0.5, 1.5),
        "bn2_beta": u(ks[9], (cexp,)),
        "bn2_mean": u(ks[10], (cexp,)),
        "bn2_var": u(ks[11], (cexp,), 0.5, 1.5),
        # project 1x1 conv (stored as (Cexp, Cout))
        "w3": u(ks[12], (cexp, out_channels)),
        "b3": u(ks[13], (out_channels,)),
        "bn3_gamma": u(ks[14], (out_channels,), 0.5, 1.5),
        "bn3_beta": u(ks[15], (out_channels,)),
        "bn3_mean": u(ks[16], (out_channels,)),
        "bn3_var": u(ks[17], (out_channels,), 0.5, 1.5),
    }


def linear_bottleneck_forward(x_nchw, params, *, stride, in_channels, out_channels, t):
    cexp = in_channels * t
    N, _, H, W = x_nchw.shape
    Ho = (H + 2 - 3) // stride + 1
    Wo = (W + 2 - 3) // stride + 1

    # Lane-dense channel padding (128-lane axis).
    cin_p = _round_up(in_channels, 128)
    cexp_p = _round_up(cexp, 128)
    cout_p = _round_up(out_channels, 128)

    # Fold BN scale into conv weights on the host; kernel only adds the shift.
    s1, b1 = _bn_fold(params["b1"], params["bn1_gamma"], params["bn1_beta"],
                      params["bn1_mean"], params["bn1_var"])
    s2, b2 = _bn_fold(params["b2"], params["bn2_gamma"], params["bn2_beta"],
                      params["bn2_mean"], params["bn2_var"])
    s3, b3 = _bn_fold(params["b3"], params["bn3_gamma"], params["bn3_beta"],
                      params["bn3_mean"], params["bn3_var"])

    w1 = jnp.pad(params["w1"] * s1[None, :],
                 ((0, cin_p - in_channels), (0, cexp_p - cexp))).astype(jnp.bfloat16)
    w2 = jnp.pad(params["w2"] * s2[None, None, :],
                 ((0, 0), (0, 0), (0, cexp_p - cexp)))                     # f32 (VPU path)
    w3 = jnp.pad(params["w3"] * s3[None, :],
                 ((0, cexp_p - cexp), (0, cout_p - out_channels))).astype(jnp.bfloat16)
    b1p = jnp.pad(b1, (0, cexp_p - cexp)).reshape(1, cexp_p)
    b2p = jnp.pad(b2, (0, cexp_p - cexp)).reshape(1, cexp_p)
    b3p = jnp.pad(b3, (0, cout_p - out_channels)).reshape(1, cout_p)

    # NCHW -> NHWC -> (N, H*W, Cin_p) bf16 (channels lane-dense, flattened in the wrapper).
    x = jnp.transpose(x_nchw, (0, 2, 3, 1)).astype(jnp.float32)
    x = jnp.pad(x, ((0, 0), (0, 0), (0, 0), (0, cin_p - in_channels)))
    x = x.reshape(N, H * W, cin_p).astype(jnp.bfloat16)

    add_residual = (stride == 1 and in_channels == out_channels)

    # Halo scratch extents (extra even-ness padding so the stride-2 parity split works).
    if stride == 1:
        Hp, Wp = H + 2, W + 2
    else:
        Hp, Wp = 2 * Ho + 2, 2 * Wo + 2

    kernel = functools.partial(_fused_kernel, H=H, W=W, Ho=Ho, Wo=Wo,
                               stride=stride, add_residual=add_residual)

    # VMEM budget computed from actual buffers (+temps +headroom), clamped for v7x.
    in_blk = H * W * cin_p * 2
    out_blk = Ho * Wo * cout_p * 4
    wts = (cin_p * cexp_p + cexp_p * cout_p) * 2 + 9 * cexp_p * 4 + (2 * cexp_p + cout_p) * 4
    xp_bytes = Hp * Wp * cexp_p * 4
    temps = 6 * max(H * W, 4 * (Ho + 1) * (Wo + 1)) * cexp_p * 4
    vmem_limit = max(16 << 20, min(64 << 20,
                                   2 * (in_blk + out_blk + wts) + xp_bytes + temps + (4 << 20)))

    flops = (2 * N * H * W * cin_p * cexp_p           # expand 1x1
             + 2 * N * Ho * Wo * 9 * cexp_p           # depthwise 3x3
             + 2 * N * Ho * Wo * cexp_p * cout_p)     # project 1x1
    bytes_accessed = (N * H * W * cin_p * 2
                      + cin_p * cexp_p * 2 + 9 * cexp_p * 4 + cexp_p * cout_p * 2
                      + (2 * cexp_p + cout_p) * 4
                      + N * Ho * Wo * cout_p * 4)

    y = pl.pallas_call(
        kernel,
        out_shape=jax.ShapeDtypeStruct((N, Ho * Wo, cout_p), jnp.float32),
        grid=(N,),
        in_specs=[
            pl.BlockSpec((1, H * W, cin_p), lambda n: (n, 0, 0)),
            pl.BlockSpec((cin_p, cexp_p), lambda n: (0, 0)),
            pl.BlockSpec((1, cexp_p), lambda n: (0, 0)),
            pl.BlockSpec((3, 3, cexp_p), lambda n: (0, 0, 0)),
            pl.BlockSpec((1, cexp_p), lambda n: (0, 0)),
            pl.BlockSpec((cexp_p, cout_p), lambda n: (0, 0)),
            pl.BlockSpec((1, cout_p), lambda n: (0, 0)),
        ],
        out_specs=pl.BlockSpec((1, Ho * Wo, cout_p), lambda n: (n, 0, 0)),
        scratch_shapes=[pltpu.VMEM((Hp, Wp, cexp_p), jnp.float32)],
        compiler_params=pltpu.CompilerParams(
            dimension_semantics=("parallel",),
            vmem_limit_bytes=int(vmem_limit),
        ),
        cost_estimate=pl.CostEstimate(flops=int(flops), transcendentals=0,
                                      bytes_accessed=int(bytes_accessed)),
    )(x, w1, b1p, w2, b2p, w3, b3p)

    y = y[:, :, :out_channels].reshape(N, Ho, Wo, out_channels)
    return jnp.transpose(y, (0, 3, 1, 2))  # NHWC -> NCHW


# ----------------------------- pure-JAX reference (for verification) -----------------------------

def reference_forward(x_nchw, params, *, stride, in_channels, out_channels, t):
    cexp = in_channels * t

    def bn(y, g, b, m, v):
        return ((y - m[None, :, None, None]) / jnp.sqrt(v + EPS)[None, :, None, None]
                * g[None, :, None, None] + b[None, :, None, None])

    w1 = params["w1"].T.reshape(cexp, in_channels, 1, 1)
    y = jax.lax.conv_general_dilated(x_nchw, w1, (1, 1), "VALID") + params["b1"][None, :, None, None]
    y = jnp.clip(bn(y, params["bn1_gamma"], params["bn1_beta"], params["bn1_mean"], params["bn1_var"]), 0.0, 6.0)

    w2 = jnp.transpose(params["w2"], (2, 0, 1)).reshape(cexp, 1, 3, 3)
    y = jax.lax.conv_general_dilated(y, w2, (stride, stride), ((1, 1), (1, 1)),
                                     feature_group_count=cexp) + params["b2"][None, :, None, None]
    y = jnp.clip(bn(y, params["bn2_gamma"], params["bn2_beta"], params["bn2_mean"], params["bn2_var"]), 0.0, 6.0)

    w3 = params["w3"].T.reshape(out_channels, cexp, 1, 1)
    y = jax.lax.conv_general_dilated(y, w3, (1, 1), "VALID") + params["b3"][None, :, None, None]
    y = bn(y, params["bn3_gamma"], params["bn3_beta"], params["bn3_mean"], params["bn3_var"])

    if stride == 1 and in_channels == out_channels:
        y = y + x_nchw
    return y


def _run_and_check(key, *, N, H, W, in_channels, out_channels, stride, t):
    kx, kp = jax.random.split(key)
    x = jax.random.normal(kx, (N, in_channels, H, W), jnp.float32)
    params = init_params(kp, in_channels, out_channels, t)

    out = linear_bottleneck_forward(x, params, stride=stride, in_channels=in_channels,
                                    out_channels=out_channels, t=t)
    out = jax.block_until_ready(out)

    Ho = (H + 2 - 3) // stride + 1
    Wo = (W + 2 - 3) // stride + 1
    assert out.shape == (N, out_channels, Ho, Wo), out.shape

    ref = reference_forward(x, params, stride=stride, in_channels=in_channels,
                            out_channels=out_channels, t=t)
    # bf16 MXU operands (f32 accumulation) -> ~2e-2 tolerance vs the f32 reference.
    if not jnp.allclose(out, ref, rtol=2e-2, atol=3e-2):
        max_err = float(jnp.max(jnp.abs(out - ref)))
        raise AssertionError(
            f"Pallas kernel mismatch vs reference (stride={stride}), max abs err = {max_err}")


if __name__ == "__main__":
    key = jax.random.PRNGKey(0)
    k1, k2 = jax.random.split(key)

    # Config 1: stride 1, residual path active.
    _run_and_check(k1, N=2, H=16, W=16, in_channels=4, out_channels=4, stride=1, t=6)
    # Config 2: stride 2 (even/odd subsample path), no residual.
    _run_and_check(k2, N=2, H=16, W=16, in_channels=4, out_channels=8, stride=2, t=6)

    print("KERNEL_OK")
</pallas_src>

<mosaic_0001>
module attributes {stable_mosaic.version = 11 : i64} {
  func.func @_fused_kernel(%arg0: i32, %arg1: memref<1x256x128xbf16, #tpu.memory_space<vmem>>, %arg2: memref<128x128xbf16, #tpu.memory_space<vmem>>, %arg3: memref<1x128xf32, #tpu.memory_space<vmem>>, %arg4: memref<3x3x128xf32, #tpu.memory_space<vmem>>, %arg5: memref<1x128xf32, #tpu.memory_space<vmem>>, %arg6: memref<128x128xbf16, #tpu.memory_space<vmem>>, %arg7: memref<1x128xf32, #tpu.memory_space<vmem>>, %arg8: memref<1x256x128xf32, #tpu.memory_space<vmem>>, %arg9: memref<18x18x128xf32, #tpu.memory_space<vmem>>) attributes {dimension_semantics = [#tpu.dimension_semantics<parallel>], iteration_bounds = array<i64: 2>, scalar_prefetch = 0 : i64, scratch_operands = 1 : i64, tpu.core_type = #tpu.core_type<tc>, window_params = [{transform_indices = @transform_0, window_bounds = array<i64: 1, 256, 128>}, {pipeline_mode = #tpu.pipeline_mode<synchronous>, transform_indices = @transform_1, window_bounds = array<i64: 128, 128>}, {pipeline_mode = #tpu.pipeline_mode<synchronous>, transform_indices = @transform_2, window_bounds = array<i64: 1, 128>}, {pipeline_mode = #tpu.pipeline_mode<synchronous>, transform_indices = @transform_3, window_bounds = array<i64: 3, 3, 128>}, {pipeline_mode = #tpu.pipeline_mode<synchronous>, transform_indices = @transform_4, window_bounds = array<i64: 1, 128>}, {pipeline_mode = #tpu.pipeline_mode<synchronous>, transform_indices = @transform_5, window_bounds = array<i64: 128, 128>}, {pipeline_mode = #tpu.pipeline_mode<synchronous>, transform_indices = @transform_6, window_bounds = array<i64: 1, 128>}, {transform_indices = @transform_7, window_bounds = array<i64: 1, 256, 128>}]} {
    %c0 = arith.constant 0 : index
    %c0_0 = arith.constant 0 : index
    %c0_1 = arith.constant 0 : index
    %0 = vector.load %arg1[%c0, %c0_0, %c0_1] : memref<1x256x128xbf16, #tpu.memory_space<vmem>>, vector<1x256x128xbf16>
    %1 = vector.shape_cast %0 : vector<1x256x128xbf16> to vector<256x128xbf16>
    %c0_2 = arith.constant 0 : index
    %c0_3 = arith.constant 0 : index
    %2 = vector.load %arg2[%c0_2, %c0_3] : memref<128x128xbf16, #tpu.memory_space<vmem>>, vector<128x128xbf16>
    %cst = arith.constant dense<0.000000e+00> : vector<256x128xf32>
    %3 = tpu.matmul %1, %2, %cst {dimension_numbers = #tpu.dot_dimension_numbers<[1], [0], [0], [1], [0, 0, 1, 1], [], []>} : vector<256x128xbf16>, vector<128x128xbf16>, vector<256x128xf32> -> vector<256x128xf32>
    %c0_4 = arith.constant 0 : index
    %c0_5 = arith.constant 0 : index
    %4 = vector.load %arg3[%c0_4, %c0_5] : memref<1x128xf32, #tpu.memory_space<vmem>>, vector<1x128xf32>
    %5 = vector.broadcast %4 : vector<1x128xf32> to vector<256x128xf32>
    %6 = arith.addf %3, %5 : vector<256x128xf32>
    %cst_6 = arith.constant 0.000000e+00 : f32
    %7 = vector.broadcast %cst_6 : f32 to vector<256x128xf32>
    %8 = arith.maximumf %6, %7 : vector<256x128xf32>
    %cst_7 = arith.constant 6.000000e+00 : f32
    %9 = vector.broadcast %cst_7 : f32 to vector<256x128xf32>
    %10 = arith.minimumf %8, %9 : vector<256x128xf32>
    %cst_8 = arith.constant 0.000000e+00 : f32
    %11 = vector.broadcast %cst_8 : f32 to vector<1x18x128xf32>
    %c0_9 = arith.constant 0 : index
    %c0_10 = arith.constant 0 : index
    %c0_11 = arith.constant 0 : index
    %12 = vector.load %arg9[%c0_9, %c0_10, %c0_11] : memref<18x18x128xf32, #tpu.memory_space<vmem>>, vector<1x18x128xf32>
    tpu.vector_store %arg9[%c0_9, %c0_10, %c0_11], %11 {strides = array<i32>} : memref<18x18x128xf32, #tpu.memory_space<vmem>>, vector<1x18x128xf32>,
    %cst_12 = arith.constant 0.000000e+00 : f32
    %13 = vector.broadcast %cst_12 : f32 to vector<1x18x128xf32>
    %c17 = arith.constant 17 : index
    %c0_13 = arith.constant 0 : index
    %c0_14 = arith.constant 0 : index
    %14 = vector.load %arg9[%c17, %c0_13, %c0_14] : memref<18x18x128xf32, #tpu.memory_space<vmem>>, vector<1x18x128xf32>
    tpu.vector_store %arg9[%c17, %c0_13, %c0_14], %13 {strides = array<i32>} : memref<18x18x128xf32, #tpu.memory_space<vmem>>, vector<1x18x128xf32>,
    %cst_15 = arith.constant 0.000000e+00 : f32
    %15 = vector.broadcast %cst_15 : f32 to vector<18x1x128xf32>
    %c0_16 = arith.constant 0 : index
    %c0_17 = arith.constant 0 : index
    %c0_18 = arith.constant 0 : index
    %16 = vector.load %arg9[%c0_16, %c0_17, %c0_18] : memref<18x18x128xf32, #tpu.memory_space<vmem>>, vector<18x1x128xf32>
    tpu.vector_store %arg9[%c0_16, %c0_17, %c0_18], %15 {strides = array<i32>} : memref<18x18x128xf32, #tpu.memory_space<vmem>>, vector<18x1x128xf32>,
    %cst_19 = arith.constant 0.000000e+00 : f32
    %17 = vector.broadcast %cst_19 : f32 to vector<18x1x128xf32>
    %c0_20 = arith.constant 0 : index
    %c17_21 = arith.constant 17 : index
    %c0_22 = arith.constant 0 : index
    %18 = vector.load %arg9[%c0_20, %c17_21, %c0_22] : memref<18x18x128xf32, #tpu.memory_space<vmem>>, vector<18x1x128xf32>
    tpu.vector_store %arg9[%c0_20, %c17_21, %c0_22], %17 {strides = array<i32>} : memref<18x18x128xf32, #tpu.memory_space<vmem>>, vector<18x1x128xf32>,
    %19 = vector.shape_cast %10 : vector<256x128xf32> to vector<16x16x128xf32>
    %c1 = arith.constant 1 : index
    %c1_23 = arith.constant 1 : index
    %c0_24 = arith.constant 0 : index
    %20 = vector.load %arg9[%c1, %c1_23, %c0_24] : memref<18x18x128xf32, #tpu.memory_space<vmem>>, vector<16x16x128xf32>
    tpu.vector_store %arg9[%c1, %c1_23, %c0_24], %19 {strides = array<i32>} : memref<18x18x128xf32, #tpu.memory_space<vmem>>, vector<16x16x128xf32>,
    %cst_25 = arith.constant 0.000000e+00 : f32
    %21 = vector.broadcast %cst_25 : f32 to vector<16x16x128xf32>
    %c0_26 = arith.constant 0 : index
    %c0_27 = arith.constant 0 : index
    %c0_28 = arith.constant 0 : index
    %22 = vector.load %arg9[%c0_26, %c0_27, %c0_28] : memref<18x18x128xf32, #tpu.memory_space<vmem>>, vector<16x16x128xf32>
    %c0_29 = arith.constant 0 : index
    %c0_30 = arith.constant 0 : index
    %c0_31 = arith.constant 0 : index
    %23 = vector.load %arg4[%c0_29, %c0_30, %c0_31] : memref<3x3x128xf32, #tpu.memory_space<vmem>>, vector<1x1x128xf32>
    %24 = vector.shape_cast %23 : vector<1x1x128xf32> to vector<128xf32>
    %25 = vector.shape_cast %24 : vector<128xf32> to vector<1x1x128xf32>
    %26 = vector.broadcast %25 : vector<1x1x128xf32> to vector<16x16x128xf32>
    %27 = arith.mulf %22, %26 : vector<16x16x128xf32>
    %28 = arith.addf %21, %27 : vector<16x16x128xf32>
    %c0_32 = arith.constant 0 : index
    %c1_33 = arith.constant 1 : index
    %c0_34 = arith.constant 0 : index
    %29 = vector.load %arg9[%c0_32, %c1_33, %c0_34] : memref<18x18x128xf32, #tpu.memory_space<vmem>>, vector<16x16x128xf32>
    %c0_35 = arith.constant 0 : index
    %c1_36 = arith.constant 1 : index
    %c0_37 = arith.constant 0 : index
    %30 = vector.load %arg4[%c0_35, %c1_36, %c0_37] : memref<3x3x128xf32, #tpu.memory_space<vmem>>, vector<1x1x128xf32>
    %31 = vector.shape_cast %30 : vector<1x1x128xf32> to vector<128xf32>
    %32 = vector.shape_cast %31 : vector<128xf32> to vector<1x1x128xf32>
    %33 = vector.broadcast %32 : vector<1x1x128xf32> to vector<16x16x128xf32>
    %34 = arith.mulf %29, %33 : vector<16x16x128xf32>
    %35 = arith.addf %28, %34 : vector<16x16x128xf32>
    %c0_38 = arith.constant 0 : index
    %c2 = arith.constant 2 : index
    %c0_39 = arith.constant 0 : index
    %36 = vector.load %arg9[%c0_38, %c2, %c0_39] : memref<18x18x128xf32, #tpu.memory_space<vmem>>, vector<16x16x128xf32>
    %c0_40 = arith.constant 0 : index
    %c2_41 = arith.constant 2 : index
    %c0_42 = arith.constant 0 : index
    %37 = vector.load %arg4[%c0_40, %c2_41, %c0_42] : memref<3x3x128xf32, #tpu.memory_space<vmem>>, vector<1x1x128xf32>
    %38 = vector.shape_cast %37 : vector<1x1x128xf32> to vector<128xf32>
    %39 = vector.shape_cast %38 : vector<128xf32> to vector<1x1x128xf32>
    %40 = vector.broadcast %39 : vector<1x1x128xf32> to vector<16x16x128xf32>
    %41 = arith.mulf %36, %40 : vector<16x16x128xf32>
    %42 = arith.addf %35, %41 : vector<16x16x128xf32>
    %c1_43 = arith.constant 1 : index
    %c0_44 = arith.constant 0 : index
    %c0_45 = arith.constant 0 : index
    %43 = vector.load %arg9[%c1_43, %c0_44, %c0_45] : memref<18x18x128xf32, #tpu.memory_space<vmem>>, vector<16x16x128xf32>
    %c1_46 = arith.constant 1 : index
    %c0_47 = arith.constant 0 : index
    %c0_48 = arith.constant 0 : index
    %44 = vector.load %arg4[%c1_46, %c0_47, %c0_48] : memref<3x3x128xf32, #tpu.memory_space<vmem>>, vector<1x1x128xf32>
    %45 = vector.shape_cast %44 : vector<1x1x128xf32> to vector<128xf32>
    %46 = vector.shape_cast %45 : vector<128xf32> to vector<1x1x128xf32>
    %47 = vector.broadcast %46 : vector<1x1x128xf32> to vector<16x16x128xf32>
    %48 = arith.mulf %43, %47 : vector<16x16x128xf32>
    %49 = arith.addf %42, %48 : vector<16x16x128xf32>
    %c1_49 = arith.constant 1 : index
    %c1_50 = arith.constant 1 : index
    %c0_51 = arith.constant 0 : index
    %50 = vector.load %arg9[%c1_49, %c1_50, %c0_51] : memref<18x18x128xf32, #tpu.memory_space<vmem>>, vector<16x16x128xf32>
    %c1_52 = arith.constant 1 : index
    %c1_53 = arith.constant 1 : index
    %c0_54 = arith.constant 0 : index
    %51 = vector.load %arg4[%c1_52, %c1_53, %c0_54] : memref<3x3x128xf32, #tpu.memory_space<vmem>>, vector<1x1x128xf32>
    %52 = vector.shape_cast %51 : vector<1x1x128xf32> to vector<128xf32>
    %53 = vector.shape_cast %52 : vector<128xf32> to vector<1x1x128xf32>
    %54 = vector.broadcast %53 : vector<1x1x128xf32> to vector<16x16x128xf32>
    %55 = arith.mulf %50, %54 : vector<16x16x128xf32>
    %56 = arith.addf %49, %55 : vector<16x16x128xf32>
    %c1_55 = arith.constant 1 : index
    %c2_56 = arith.constant 2 : index
    %c0_57 = arith.constant 0 : index
    %57 = vector.load %arg9[%c1_55, %c2_56, %c0_57] : memref<18x18x128xf32, #tpu.memory_space<vmem>>, vector<16x16x128xf32>
    %c1_58 = arith.constant 1 : index
    %c2_59 = arith.constant 2 : index
    %c0_60 = arith.constant 0 : index
    %58 = vector.load %arg4[%c1_58, %c2_59, %c0_60] : memref<3x3x128xf32, #tpu.memory_space<vmem>>, vector<1x1x128xf32>
    %59 = vector.shape_cast %58 : vector<1x1x128xf32> to vector<128xf32>
    %60 = vector.shape_cast %59 : vector<128xf32> to vector<1x1x128xf32>
    %61 = vector.broadcast %60 : vector<1x1x128xf32> to vector<16x16x128xf32>
    %62 = arith.mulf %57, %61 : vector<16x16x128xf32>
    %63 = arith.addf %56, %62 : vector<16x16x128xf32>
    %c2_61 = arith.constant 2 : index
    %c0_62 = arith.constant 0 : index
    %c0_63 = arith.constant 0 : index
    %64 = vector.load %arg9[%c2_61, %c0_62, %c0_63] : memref<18x18x128xf32, #tpu.memory_space<vmem>>, vector<16x16x128xf32>
    %c2_64 = arith.constant 2 : index
    %c0_65 = arith.constant 0 : index
    %c0_66 = arith.constant 0 : index
    %65 = vector.load %arg4[%c2_64, %c0_65, %c0_66] : memref<3x3x128xf32, #tpu.memory_space<vmem>>, vector<1x1x128xf32>
    %66 = vector.shape_cast %65 : vector<1x1x128xf32> to vector<128xf32>
    %67 = vector.shape_cast %66 : vector<128xf32> to vector<1x1x128xf32>
    %68 = vector.broadcast %67 : vector<1x1x128xf32> to vector<16x16x128xf32>
    %69 = arith.mulf %64, %68 : vector<16x16x128xf32>
    %70 = arith.addf %63, %69 : vector<16x16x128xf32>
    %c2_67 = arith.constant 2 : index
    %c1_68 = arith.constant 1 : index
    %c0_69 = arith.constant 0 : index
    %71 = vector.load %arg9[%c2_67, %c1_68, %c0_69] : memref<18x18x128xf32, #tpu.memory_space<vmem>>, vector<16x16x128xf32>
    %c2_70 = arith.constant 2 : index
    %c1_71 = arith.constant 1 : index
    %c0_72 = arith.constant 0 : index
    %72 = vector.load %arg4[%c2_70, %c1_71, %c0_72] : memref<3x3x128xf32, #tpu.memory_space<vmem>>, vector<1x1x128xf32>
    %73 = vector.shape_cast %72 : vector<1x1x128xf32> to vector<128xf32>
    %74 = vector.shape_cast %73 : vector<128xf32> to vector<1x1x128xf32>
    %75 = vector.broadcast %74 : vector<1x1x128xf32> to vector<16x16x128xf32>
    %76 = arith.mulf %71, %75 : vector<16x16x128xf32>
    %77 = arith.addf %70, %76 : vector<16x16x128xf32>
    %c2_73 = arith.constant 2 : index
    %c2_74 = arith.constant 2 : index
    %c0_75 = arith.constant 0 : index
    %78 = vector.load %arg9[%c2_73, %c2_74, %c0_75] : memref<18x18x128xf32, #tpu.memory_space<vmem>>, vector<16x16x128xf32>
    %c2_76 = arith.constant 2 : index
    %c2_77 = arith.constant 2 : index
    %c0_78 = arith.constant 0 : index
    %79 = vector.load %arg4[%c2_76, %c2_77, %c0_78] : memref<3x3x128xf32, #tpu.memory_space<vmem>>, vector<1x1x128xf32>
    %80 = vector.shape_cast %79 : vector<1x1x128xf32> to vector<128xf32>
    %81 = vector.shape_cast %80 : vector<128xf32> to vector<1x1x128xf32>
    %82 = vector.broadcast %81 : vector<1x1x128xf32> to vector<16x16x128xf32>
    %83 = arith.mulf %78, %82 : vector<16x16x128xf32>
    %84 = arith.addf %77, %83 : vector<16x16x128xf32>
    %c0_79 = arith.constant 0 : index
    %c0_80 = arith.constant 0 : index
    %85 = vector.load %arg5[%c0_79, %c0_80] : memref<1x128xf32, #tpu.memory_space<vmem>>, vector<1x128xf32>
    %86 = vector.shape_cast %85 : vector<1x128xf32> to vector<128xf32>
    %87 = vector.shape_cast %86 : vector<128xf32> to vector<1x1x128xf32>
    %88 = vector.broadcast %87 : vector<1x1x128xf32> to vector<16x16x128xf32>
    %89 = arith.addf %84, %88 : vector<16x16x128xf32>
    %cst_81 = arith.constant 0.000000e+00 : f32
    %90 = vector.broadcast %cst_81 : f32 to vector<16x16x128xf32>
    %91 = arith.maximumf %89, %90 : vector<16x16x128xf32>
    %cst_82 = arith.constant 6.000000e+00 : f32
    %92 = vector.broadcast %cst_82 : f32 to vector<16x16x128xf32>
    %93 = arith.minimumf %91, %92 : vector<16x16x128xf32>
    %94 = vector.shape_cast %93 : vector<16x16x128xf32> to vector<256x128xf32>
    %95 = arith.truncf %94 : vector<256x128xf32> to vector<256x128xbf16>
    %c0_83 = arith.constant 0 : index
    %c0_84 = arith.constant 0 : index
    %96 = vector.load %arg6[%c0_83, %c0_84] : memref<128x128xbf16, #tpu.memory_space<vmem>>, vector<128x128xbf16>
    %cst_85 = arith.constant dense<0.000000e+00> : vector<256x128xf32>
    %97 = tpu.matmul %95, %96, %cst_85 {dimension_numbers = #tpu.dot_dimension_numbers<[1], [0], [0], [1], [0, 0, 1, 1], [], []>} : vector<256x128xbf16>, vector<128x128xbf16>, vector<256x128xf32> -> vector<256x128xf32>
    %c0_86 = arith.constant 0 : index
    %c0_87 = arith.constant 0 : index
    %98 = vector.load %arg7[%c0_86, %c0_87] : memref<1x128xf32, #tpu.memory_space<vmem>>, vector<1x128xf32>
    %99 = vector.broadcast %98 : vector<1x128xf32> to vector<256x128xf32>
    %100 = arith.addf %97, %99 : vector<256x128xf32>
    %c0_88 = arith.constant 0 : index
    %c0_89 = arith.constant 0 : index
    %c0_90 = arith.constant 0 : index
    %101 = vector.load %arg1[%c0_88, %c0_89, %c0_90] : memref<1x256x128xbf16, #tpu.memory_space<vmem>>, vector<1x256x128xbf16>
    %102 = vector.shape_cast %101 : vector<1x256x128xbf16> to vector<256x128xbf16>
    %103 = arith.extf %102 : vector<256x128xbf16> to vector<256x128xf32>
    %104 = arith.addf %100, %103 : vector<256x128xf32>
    %c0_91 = arith.constant 0 : index
    %c0_92 = arith.constant 0 : index
    %c0_93 = arith.constant 0 : index
    %105 = vector.load %arg8[%c0_91, %c0_92, %c0_93] : memref<1x256x128xf32, #tpu.memory_space<vmem>>, vector<1x256x128xf32>
    %106 = vector.shape_cast %105 : vector<1x256x128xf32> to vector<256x128xf32>
    %107 = vector.shape_cast %104 : vector<256x128xf32> to vector<1x256x128xf32>
    tpu.vector_store %arg8[%c0_91, %c0_92, %c0_93], %107 {strides = array<i32>} : memref<1x256x128xf32, #tpu.memory_space<vmem>>, vector<1x256x128xf32>,
    return
  }
  func.func @transform_0(%arg0: i32) -> (i32, i32, i32) {
    %c0_i32 = arith.constant 0 : i32
    %c0_i32_0 = arith.constant 0 : i32
    %c0_i32_1 = arith.constant 0 : i32
    return %arg0, %c0_i32, %c0_i32_0 : i32, i32, i32
  }
  func.func @transform_1(%arg0: i32) -> (i32, i32) {
    %c0_i32 = arith.constant 0 : i32
    %c0_i32_0 = arith.constant 0 : i32
    %c0_i32_1 = arith.constant 0 : i32
    return %c0_i32, %c0_i32_0 : i32, i32
  }
  func.func @transform_2(%arg0: i32) -> (i32, i32) {
    %c0_i32 = arith.constant 0 : i32
    %c0_i32_0 = arith.constant 0 : i32
    %c0_i32_1 = arith.constant 0 : i32
    return %c0_i32, %c0_i32_0 : i32, i32
  }
  func.func @transform_3(%arg0: i32) -> (i32, i32, i32) {
    %c0_i32 = arith.constant 0 : i32
    %c0_i32_0 = arith.constant 0 : i32
    %c0_i32_1 = arith.constant 0 : i32
    %c0_i32_2 = arith.constant 0 : i32
    return %c0_i32, %c0_i32_0, %c0_i32_1 : i32, i32, i32
  }
  func.func @transform_4(%arg0: i32) -> (i32, i32) {
    %c0_i32 = arith.constant 0 : i32
    %c0_i32_0 = arith.constant 0 : i32
    %c0_i32_1 = arith.constant 0 : i32
    return %c0_i32, %c0_i32_0 : i32, i32
  }
  func.func @transform_5(%arg0: i32) -> (i32, i32) {
    %c0_i32 = arith.constant 0 : i32
    %c0_i32_0 = arith.constant 0 : i32
    %c0_i32_1 = arith.constant 0 : i32
    return %c0_i32, %c0_i32_0 : i32, i32
  }
  func.func @transform_6(%arg0: i32) -> (i32, i32) {
    %c0_i32 = arith.constant 0 : i32
    %c0_i32_0 = arith.constant 0 : i32
    %c0_i32_1 = arith.constant 0 : i32
    return %c0_i32, %c0_i32_0 : i32, i32
  }
  func.func @transform_7(%arg0: i32) -> (i32, i32, i32) {
    %c0_i32 = arith.constant 0 : i32
    %c0_i32_0 = arith.constant 0 : i32
    %c0_i32_1 = arith.constant 0 : i32
    return %arg0, %c0_i32, %c0_i32_0 : i32, i32, i32
  }
}

</mosaic_0001>

<bundles_post_ra>
// kernel: tpu_custom_call.1
= control target key start
LH: loop header
LB: loop body
LE: loop exit
PB: predicated region body
PF: predicated region fallthrough
CT: control target
= control target key end

     0   :  { %s3880_s0 = inlined_call_operand.hbm [shape: bf16[2,256,128], index: 0, kind: input, shape index: {}]   ;;  %s3881_s1 = inlined_call_operand.hbm [shape: bf16[128,128], index: 1, kind: input, shape index: {}]   ;;  %s3882_s2 = inlined_call_operand.vmem [shape: f32[1,128], index: 2, kind: input, shape index: {}]   ;;  %s3883_s3 = inlined_call_operand.hbm [shape: f32[3,3,128], index: 3, kind: input, shape index: {}]   ;;  %s3884_s4 = inlined_call_operand.vmem [shape: f32[1,128], index: 4, kind: input, shape index: {}]   ;;  %s3885_s5 = inlined_call_operand.hbm [shape: bf16[128,128], index: 5, kind: input, shape index: {}]   ;;  %s3886_s6 = inlined_call_operand.vmem [shape: f32[1,128], index: 6, kind: input, shape index: {}]   ;;  %s3887_s7 = inlined_call_operand.hbm [shape: f32[2,256,128], index: 7, kind: output, shape index: {}]  }
   0x1   :  { %3906 = sst [smem:[#allocation30_spill]] %s3881_s1 }
   0x2   :  { %12 = vsyncpa [#allocation4], 0 }
   0x3   :  { %14 = vsyncpa [#allocation4 + $0x1], 0 }
   0x4   :  { %15 = vsyncpa [#allocation7], 0 }
   0x5   :  { %16 = vsyncpa [#allocation10], 0 }
   0x6   :  { %17 = vsyncpa [#allocation5], 0 }
   0x7   :  { %19 = vsyncpa [#allocation5 + $0x1], 0  ;;  %s2805_s24 = smov 0   ;;  %s2807_s25 = smov 0  }
   0x8   :  { %s2809_s26 = smov 0   ;;  %s2811_s27 = smov 0  }
   0x9 LB: > { %s2826_s28 = sadd.s32 4294967295, %s2755_s27   ;;  %s2178_s29 = sadd.s32 4294967294, %s2755_s27   ;;  %s2755_s27 = sphi %s2811_s27, %s3948_s27   ;;  %s2751_s26 = sphi %s2809_s26, %s3947_s26   ;;  %s2747_s25 = sphi %s2807_s25, %s3946_s25   ;;  %s2743_s24 = sphi %s2805_s24, %s3945_s24  }
   0xa   : > { %p45_p0 = scmp.ne.s32.totalorder %s2747_s25, %s2743_s24  ;;  %p46_p1 = scmp.eq.s32.totalorder %s2826_s28, 0 }
   0xb   : > { %p195_p2 = scmp.eq.s32.totalorder %s2826_s28, 1  ;;  %p201_p3 = scmp.eq.s32.totalorder %s2178_s29, 1 }
   0xc   : > { %p2835_p4 = por %p46_p1, %p45_p0  ;;  %p2179_p5 = scmp.ge.s32.totalorder %s2755_s27, 1 }
   0xd   : > { %p2840_p6 = por %p201_p3, %p45_p0  ;;  %p208_p7 = scmp.lt.s32.totalorder %s2755_s27, 3 }
   0xe   : > { %s3909_s1 = sld [smem:[#allocation30_spill]]  ;;  %s2757_s13 = smov [#allocation6]  }
   0xf   : > { %p2848_p8 = pnand %p2179_p5, %p208_p7  ;;  %s221_s14 = sshll.u32 %s2757_s13, 4  ;;  %s222_s14 = int_to_ptr.vmem [resolvable:$true] %s221_s14 }
  0x10   : > { %s236_s18 = sshll.u32 %s3883_s3, 4  ;;  %s3888_s19 = smov 64   ;;  %s237_s18 = int_to_ptr.hbm [resolvable:$true] %s236_s18 }
  0x11   : > { %p2471_p9 = pneg %p2848_p8  ;;  %s3889_s20 = smov 4  }
  0x12   : > { %s2760_s21 = smov [#allocation8]   ;;  %s253_s9 = sshll.u32 %s3885_s5, 4  ;;  %s254_s9 = int_to_ptr.hbm [resolvable:$true] %s253_s9 }
  0x13   : > { %p2856_p10 = pnand %p2471_p9, %p46_p1  ;;  %s238_s22 = sshll.u32 %s2760_s21, 4  ;;  %s239_s22 = int_to_ptr.vmem [resolvable:$true] %s238_s22 }
  0x14   : > { %s219_s11 = sshll.u32 %s3909_s1, 4  ;;  %s2761_s10 = smov [#allocation9]   ;;  %s220_s11 = int_to_ptr.hbm [resolvable:$true] %s219_s11 }
  0x15   : > { %2474 = dma.hbm_to_vmem [thread:$0]  (!%p2856_p10), %s220_s11, 1024, %s222_s14, [#allocation7], %s3888_s19, %s3888_s19, %s3889_s20  }
  0x16   : > { %2477 = dma.hbm_to_vmem [thread:$0]  (!%p2856_p10), %s237_s18, 192, %s239_s22, [#allocation7], %s3888_s19, %s3888_s19, %s3889_s20  }
  0x17   : > { %s255_s11 = sshll.u32 %s2761_s10, 4  ;;  %s2878_s13 = sadd.s32 1, %s2755_s27   ;;  %s256_s11 = int_to_ptr.vmem [resolvable:$true] %s255_s11 }
  0x18   : > { %2480 = dma.hbm_to_vmem [thread:$0]  (!%p2856_p10), %s254_s9, 1024, %s256_s11, [#allocation10], %s3888_s19, %s3888_s19, %s3889_s20  }
  0x19   : > { %s29_s14 = ssub.s32 %s2755_s27, %s2878_s13  ;;  %s32_s16 = sadd.s32 1, %s2751_s26 }
  0x1a   : > { %p30_p12 = scmp.eq.s32.totalorder %s29_s14, 0  ;;  %p39_p13 = scmp.ne.s32.totalorder %s2751_s26, %s2747_s25 }
  0x1b   : > { %p40_p0 = scmp.eq.s32.totalorder %s2755_s27, 0  ;;  %p2492_p5 = scmp.lt.s32.totalorder %s2755_s27, 2 }
  0x1c   : > { %s2892_s17 = scalar_select %p30_p12, %s2751_s26, %s32_s16  }
  0x1d   : > { %p2896_p3 = por %p195_p2, %p39_p13  ;;  %s272_s21 = sand.u32 1, %s2751_s26  }
  0x1e   : > { %s2326_s15 = sshll.u32 %s2755_s27, 7  ;;  %p41_p7 = por %p40_p0, %p39_p13 }
  0x1f   : > { %s2184_s22 = sshll.u32 %s272_s21, 7  ;;  %s281_s9 = scalar_lea.hbm %s3880_s0, %s2326_s15 }
  0x20   : > { %s282_s10 = sshll.u32 %s281_s9, 4  ;;  %s276_s11 = scalar_lea.vmem [#allocation3], %s2184_s22  ;;  %s283_s10 = int_to_ptr.hbm [resolvable:$true] %s282_s10 }
  0x21   : > { %s284_s14 = sshll.u32 %s276_s11, 4  ;;  %p2906_p9 = pnand %p2492_p5, %p41_p7  ;;  %s285_s14 = int_to_ptr.vmem [resolvable:$true] %s284_s14 }
  0x22   : > { %s273_s19 = scalar_lea.sflag [#allocation4], %s272_s21  ;;  %s2651_s20 = sshra.s32 %s283_s10, 4  ;;  %s2652_s20 = int_to_ptr.hbm [resolvable:$true] %s2651_s20 }
  0x23   : > { %s2653_s1 = scalar_lea.hbm %s2652_s20, 128  ;;  %p2655_p10 = pneg %p2906_p9 }
  0x24   : > { %p2654_p2 = scmp.ne.s32.totalorder %s2652_s20, %s2653_s1  ;;  %s2658_s22 = scalar_lea.hbm %s3880_s0, 256 }
  0x25   : > { %p2659_p0 = scmp.lt.s32.totalorder %s2652_s20, %s3880_s0  ;;  %p2660_p5 = scmp.lt.s32.totalorder %s2658_s22, %s2653_s1 }
  0x26   : > { %p2656_p12 = pnand %p2655_p10, %p2654_p2 }
  0x27   : > { %p2661_p7 = por %p2660_p5, %p2659_p0 }
  0x28   : > { %p2657_p13 = pneg %p2656_p12 }
  0x2a   : > { %p2662_p11 = pnand %p2661_p7, %p2657_p13 }
  0x2c   : > { %2665 = shalt.err (!%p2662_p11)
}
  0x2d   : > { %s3914_s21 = smov 4   ;;  %s3915_s11 = smov 64  }
  0x2e   : > { %2484 = dma.hbm_to_vmem [thread:$0]  (!%p2906_p9), %s283_s10, 2048, %s285_s14, %s273_s19, %s3915_s11, %s3915_s11, %s3914_s21  }
  0x2f   : > { %296 = sbr.rel (%p2848_p8) target bundleno = 638 (0x27e), region = 48 }
  0x34   : > { %s2926_s15 = sand.u32 1, %s2747_s25  }
  0x35   : > { %s2188_s20 = sshll.u32 %s2926_s15, 7  ;;  %s299_s1 = scalar_lea.sflag [#allocation4], %s2926_s15 }
  0x36   : > { %s2930_s23 = scalar_lea.vmem [#allocation3], %s2188_s20 }
  0x37   : > { %2726 = dma.done.wait (%p2835_p4), %s299_s1, 2048  }
  0x38   : > { %2728 = vsyncadd (%p2835_p4), %s299_s1, 4294965248 }
  0x39   : > { %2730 = dma.done.wait (%p46_p1), [#allocation7], 1216  }
  0x3a   : > { %2732 = vsyncadd (%p46_p1), [#allocation7], 4294966080 }
  0x3b   : > { %2734 = dma.done.wait (%p46_p1), [#allocation10], 1024  }
  0x3c   : > { %2736 = vsyncadd (%p46_p1), [#allocation10], 4294966272  ;;  %v2350_v0 = vld [vmem:[#allocation6 + $0x38] sm:$0xff]  ;;  %v2349_v1 = vld [vmem:[#allocation6 + $0x30] sm:$0xff]  ;;  %v2762_v20 = vmov 0.0   ;;  %s2192_s11 = sshll.u32 %s2926_s15, 8 }
  0x3d   : > { %545 = vmatpush.bf16.msra.mxu0 %v2350_v0  ;;  %2439 = vmatpush.bf16.msra.mxu2 %v2350_v0  ;;  %v2348_v2 = vld [vmem:[#allocation6 + $0x28] sm:$0xff]  ;;  %v2347_v3 = vld [vmem:[#allocation6 + $0x20] sm:$0xff]  ;;  %v2346_v4 = vld [vmem:[#allocation6 + $0x18] sm:$0xff]  ;;  %698 = vst [vmem:[#allocation2] sm:$0xff] %v2762_v20  ;;  %s3645_s20 = scalar_lea.vmem [#allocation11], %s2192_s11  ;;  %s2359_s1 = sshll.u32 %s2826_s28, 8 }
  0x3e   : > { %v2345_v5 = vld [vmem:[#allocation6 + $0x10] sm:$0xff]  ;;  %v2344_v6 = vld [vmem:[#allocation6 + $0x8] sm:$0xff]  ;;  %v2343_v7 = vld [vmem:[#allocation6] sm:$0xff]  ;;  %699 = vst [vmem:[#allocation2 + $0x8] sm:$0xff] %v2762_v20  ;;  %s2072_s19 = scalar_lea.hbm %s3887_s7, %s2359_s1  ;;  %s2073_s10 = sshll.u32 %s3645_s20, 4  ;;  %s2074_s10 = int_to_ptr.vmem [resolvable:$true] %s2073_s10 }
  0x3f   : > { %v2327_v8 = vld [vmem:[%s2930_s23] sm:$0xff]  ;;  %v2328_v9 = vld [vmem:[%s2930_s23 + $0x8] sm:$0xff]  ;;  %v2329_v10 = vld [vmem:[%s2930_s23 + $0x10] sm:$0xff]  ;;  %700 = vst [vmem:[#allocation2 + $0x10] sm:$0x3] %v2762_v20  ;;  %s2075_s14 = sshll.u32 %s2072_s19, 4  ;;  %s2076_s14 = int_to_ptr.hbm [resolvable:$true] %s2075_s14 }
  0x40   : > { %v2335_v11 = vld [vmem:[%s2930_s23 + $0x40] sm:$0xff]  ;;  %v2330_v12 = vld [vmem:[%s2930_s23 + $0x18] sm:$0xff]  ;;  %v2336_v13 = vld [vmem:[%s2930_s23 + $0x48] sm:$0xff]  ;;  %705 = vst [vmem:[#allocation2] sm:$0x1] %v2762_v20  ;;  %s2695_s16 = sshra.s32 %s2076_s14, 4  ;;  %s2696_s16 = int_to_ptr.hbm [resolvable:$true] %s2695_s16 }
  0x41   : > { %546 = vmatpush.bf16.msra.mxu0 %v2349_v1  ;;  %2440 = vmatpush.bf16.msra.mxu2 %v2349_v1  ;;  %v2331_v14 = vld [vmem:[%s2930_s23 + $0x20] sm:$0xff]  ;;  %v2337_v15 = vld [vmem:[%s2930_s23 + $0x50] sm:$0xff]  ;;  %v2332_v16 = vld [vmem:[%s2930_s23 + $0x28] sm:$0xff]  ;;  %706 = vst [vmem:[#allocation2 + $0x18] sm:$0x1] %v2762_v20  ;;  %s2697_s28 = scalar_lea.hbm %s2696_s16, 256  ;;  %p2702_p11 = scmp.lt.s32.totalorder %s2696_s16, %s3887_s7 }
  0x42   : > { %v2338_v17 = vld [vmem:[%s2930_s23 + $0x58] sm:$0xff]  ;;  %v2333_v18 = vld [vmem:[%s2930_s23 + $0x30] sm:$0xff]  ;;  %v2339_v19 = vld [vmem:[%s2930_s23 + $0x60] sm:$0xff]  ;;  %707 = vst [vmem:[#allocation2 + $0x30] sm:$0x1] %v2762_v20  ;;  %p2698_p1 = scmp.ne.s32.totalorder %s2696_s16, %s2697_s28  ;;  %s2701_s9 = scalar_lea.hbm %s3887_s7, 512 }
  0x43   : > { %723 = vst [vmem:[#allocation2 + $0x11] sm:$0x1] %v2762_v20  ;;  %v2334_v21 = vld [vmem:[%s2930_s23 + $0x38] sm:$0xff]  ;;  %v2340_v22 = vld [vmem:[%s2930_s23 + $0x68] sm:$0xff]  ;;  %v2988_v25 = vld [vmem:[%s3882_s2] ss:$0 sm:$0xff]  ;;  %p2703_p9 = scmp.lt.s32.totalorder %s2701_s9, %s2697_s28 }
  0x44   : > { %724 = vst [vmem:[#allocation2 + $0x29] sm:$0x1] %v2762_v20  ;;  %v2358_v23 = vld [vmem:[#allocation9 + $0x38] sm:$0xff]  ;;  %v2357_v24 = vld [vmem:[#allocation9 + $0x30] sm:$0xff]  ;;  %v2356_v26 = vld [vmem:[#allocation9 + $0x28] sm:$0xff]  ;;  %p2699_p4 = pnand %p2698_p1, %p2896_p3 }
  0x45   : > { %547 = vmatpush.bf16.msra.mxu0 %v2348_v2  ;;  %2441 = vmatpush.bf16.msra.mxu2 %v2348_v2  ;;  %725 = vst [vmem:[#allocation2 + $0x41] sm:$0x1] %v2762_v20  ;;  %v2341_v27 = vld [vmem:[%s2930_s23 + $0x70] sm:$0xff]  ;;  %v2354_v33 = vld [vmem:[#allocation9 + $0x18] sm:$0xff]  ;;  %v2353_v36 = vld [vmem:[#allocation9 + $0x10] sm:$0xff]  ;;  %p2704_p2 = por %p2703_p9, %p2702_p11 }
  0x46   : > { %702 = vst [vmem:[#allocation2 + $0x198] sm:$0xff] %v2762_v20  ;;  %1843 = vmatpush.bf16.msra.mxu1 %v2358_v23  ;;  %2447 = vmatpush.bf16.msra.mxu3 %v2358_v23  ;;  %v2355_v30 = vld [vmem:[#allocation9 + $0x20] sm:$0xff]  ;;  %v3009_v38 = vld [vmem:[#allocation8] ss:$0 sm:$0xff]  ;;  %v3015_v42 = vld [vmem:[#allocation8 + $0x1] ss:$0 sm:$0xff]  ;;  %p2700_p8 = pneg %p2699_p4 }
  0x47   : > { %703 = vst [vmem:[#allocation2 + $0x1a0] sm:$0xff] %v2762_v20  ;;  %v774_v39 = vld [vmem:[#allocation2] sm:$0xff]  ;;  %v3017_v44 = vld [vmem:[#allocation8 + $0x2] ss:$0 sm:$0xff]  ;;  %v2342_v45 = vld [vmem:[%s2930_s23 + $0x78] sm:$0xff]  ;;  %v809_v55 = vmul.f32 0.0, %v3009_v38 }
  0x48   : > { %704 = vst [vmem:[#allocation2 + $0x1a8] sm:$0x3] %v2762_v20  ;;  %v872_v40 = vld [vmem:[#allocation2 + $0x1] sm:$0xff]  ;;  %v808_v46 = vmul.f32 %v3009_v38, %v774_v39  ;;  %v873_v50 = vld [vmem:[#allocation2 + $0x9] sm:$0xff]  ;;  %v3027_v58 = vld [vmem:[#allocation8 + $0x4] ss:$0 sm:$0xff]  ;;  %p2705_p10 = pnand %p2704_p2, %p2700_p8 }
  0x49   : > { %548 = vmatpush.bf16.msra.mxu0 %v2347_v3  ;;  %2442 = vmatpush.bf16.msra.mxu2 %v2347_v3  ;;  %708 = vst [vmem:[#allocation2 + $0x48] sm:$0x1] %v2762_v20  ;;  %v2352_v43 = vld [vmem:[#allocation9 + $0x8] sm:$0xff]  ;;  %v906_v47 = vmul.f32 %v3015_v42, %v872_v40  ;;  %v2351_v52 = vld [vmem:[#allocation9] sm:$0xff]  ;;  %v907_v56 = vmul.f32 %v3015_v42, %v873_v50 }
  0x4a   : > { %709 = vst [vmem:[#allocation2 + $0x60] sm:$0x1] %v2762_v20  ;;  %1844 = vmatpush.bf16.msra.mxu1 %v2357_v24  ;;  %2448 = vmatpush.bf16.msra.mxu3 %v2357_v24  ;;  %v970_v48 = vld [vmem:[#allocation2 + $0x2] sm:$0xff]  ;;  %v971_v59 = vld [vmem:[#allocation2 + $0xa] sm:$0xff]  ;;  %v3055_v24 = vld [vmem:[#allocation8 + $0x9] ss:$0 sm:$0xff] }
  0x4b   : > { %710 = vst [vmem:[#allocation2 + $0x78] sm:$0x1] %v2762_v20  ;;  %v1004_v53 = vmul.f32 %v3017_v44, %v970_v48  ;;  %v938_v57 = vadd.f32 %v906_v47, %v808_v46  ;;  %v939_v62 = vadd.f32 %v907_v56, %v809_v55  ;;  %v1005_v63 = vmul.f32 %v3017_v44, %v971_v59 }
  0x4c   : > { %711 = vst [vmem:[#allocation2 + $0x90] sm:$0x1] %v2762_v20 }
  0x4d   : > { %549 = vmatpush.bf16.msra.mxu0 %v2346_v4  ;;  %2443 = vmatpush.bf16.msra.mxu2 %v2346_v4  ;;  %712 = vst [vmem:[#allocation2 + $0xa8] sm:$0x1] %v2762_v20  ;;  %v1036_v0 = vadd.f32 %v1004_v53, %v938_v57 }
  0x4e   : > { %713 = vst [vmem:[#allocation2 + $0xc0] sm:$0x1] %v2762_v20  ;;  %1845 = vmatpush.bf16.msra.mxu1 %v2356_v26  ;;  %2449 = vmatpush.bf16.msra.mxu3 %v2356_v26 }
  0x4f   : > { %714 = vst [vmem:[#allocation2 + $0xd8] sm:$0x1] %v2762_v20 }
  0x50   : > { %715 = vst [vmem:[#allocation2 + $0xf0] sm:$0x1] %v2762_v20 }
  0x51   : > { %550 = vmatpush.bf16.msra.mxu0 %v2345_v5  ;;  %2444 = vmatpush.bf16.msra.mxu2 %v2345_v5  ;;  %716 = vst [vmem:[#allocation2 + $0x108] sm:$0x1] %v2762_v20  ;;  %v3035_v5 = vld [vmem:[#allocation8 + $0x5] ss:$0 sm:$0xff] }
  0x52   : > { %717 = vst [vmem:[#allocation2 + $0x120] sm:$0x1] %v2762_v20  ;;  %1846 = vmatpush.bf16.msra.mxu1 %v2355_v30  ;;  %2450 = vmatpush.bf16.msra.mxu3 %v2355_v30 }
  0x53   : > { %718 = vst [vmem:[#allocation2 + $0x138] sm:$0x1] %v2762_v20 }
  0x54   : > { %719 = vst [vmem:[#allocation2 + $0x150] sm:$0x1] %v2762_v20 }
  0x55   : > { %551 = vmatpush.bf16.msra.mxu0 %v2344_v6  ;;  %2445 = vmatpush.bf16.msra.mxu2 %v2344_v6  ;;  %720 = vst [vmem:[#allocation2 + $0x168] sm:$0x1] %v2762_v20  ;;  %v3037_v6 = vld [vmem:[#allocation8 + $0x6] ss:$0 sm:$0xff] }
  0x56   : > { %721 = vst [vmem:[#allocation2 + $0x180] sm:$0x1] %v2762_v20  ;;  %1847 = vmatpush.bf16.msra.mxu1 %v2354_v33  ;;  %2451 = vmatpush.bf16.msra.mxu3 %v2354_v33 }
  0x57   : > { %726 = vst [vmem:[#allocation2 + $0x59] sm:$0x1] %v2762_v20 }
  0x58   : > { %727 = vst [vmem:[#allocation2 + $0x71] sm:$0x1] %v2762_v20 }
  0x59   : > { %552 = vmatpush.bf16.msra.mxu0 %v2343_v7  ;;  %2446 = vmatpush.bf16.msra.mxu2 %v2343_v7  ;;  %728 = vst [vmem:[#allocation2 + $0x89] sm:$0x1] %v2762_v20 }
  0x5a   : > { %729 = vst [vmem:[#allocation2 + $0xa1] sm:$0x1] %v2762_v20  ;;  %1848 = vmatpush.bf16.msra.mxu1 %v2353_v36  ;;  %2452 = vmatpush.bf16.msra.mxu3 %v2353_v36 }
  0x5b   : > { %730 = vst [vmem:[#allocation2 + $0xb9] sm:$0x1] %v2762_v20 }
  0x5c   : > { %553 = vmatmul.bf16.vlgmr.msra.gmra.mxu0 %v2327_v8  ;;  %593 = vmatmul.bf16.vlgmr.msra.gmra.mxu2 %v2335_v11  ;;  %731 = vst [vmem:[#allocation2 + $0xd1] sm:$0x1] %v2762_v20 }
  0x5d   : > { %732 = vst [vmem:[#allocation2 + $0xe9] sm:$0x1] %v2762_v20 }
  0x5e   : > { %733 = vst [vmem:[#allocation2 + $0x101] sm:$0x1] %v2762_v20  ;;  %1849 = vmatpush.bf16.msra.mxu1 %v2352_v43  ;;  %2453 = vmatpush.bf16.msra.mxu3 %v2352_v43 }
  0x5f   : > { %734 = vst [vmem:[#allocation2 + $0x119] sm:$0x1] %v2762_v20 }
  0x60   : > { %735 = vst [vmem:[#allocation2 + $0x131] sm:$0x1] %v2762_v20 }
  0x61   : > { %736 = vst [vmem:[#allocation2 + $0x149] sm:$0x1] %v2762_v20 }
  0x62   : > { %737 = vst [vmem:[#allocation2 + $0x161] sm:$0x1] %v2762_v20  ;;  %1850 = vmatpush.bf16.msra.mxu1 %v2351_v52  ;;  %2454 = vmatpush.bf16.msra.mxu3 %v2351_v52  ;;  %v3079_v52 = vld [vmem:[%s3884_s4] ss:$0 sm:$0xff] }
  0x63   : > { %738 = vst [vmem:[#allocation2 + $0x179] sm:$0x1] %v2762_v20 }
  0x64   : > { %739 = vst [vmem:[#allocation2 + $0x191] sm:$0x1] %v2762_v20 }
  0x65   : > { %722 = vst [vmem:[#allocation2 + $0x198] sm:$0x1] %v2762_v20 }
  0x66   : > { %740 = vst [vmem:[#allocation2 + $0x1a9] sm:$0x1] %v2762_v20 }
  0x6c   : > { %558 = vmatmul.bf16.gmra.mxu0 %v2328_v9  ;;  %598 = vmatmul.bf16.gmra.mxu2 %v2336_v13  ;;  %v1037_v9 = vadd.f32 %v1005_v63, %v939_v62 }
  0x7c   : > { %563 = vmatmul.bf16.gmra.mxu0 %v2329_v10  ;;  %603 = vmatmul.bf16.gmra.mxu2 %v2337_v15 }
  0x8c   : > { %568 = vmatmul.bf16.gmra.mxu0 %v2330_v12  ;;  %608 = vmatmul.bf16.gmra.mxu2 %v2338_v17  ;;  %v3040_v12 = vld [vmem:[#allocation8 + $0x8] ss:$0 sm:$0xff] }
  0x9c   : > { %573 = vmatmul.bf16.gmra.mxu0 %v2331_v14  ;;  %613 = vmatmul.bf16.gmra.mxu2 %v2339_v19 }
  0xac   : > { %578 = vmatmul.bf16.gmra.mxu0 %v2332_v16  ;;  %618 = vmatmul.bf16.gmra.mxu2 %v2340_v22 }
  0xbc   : > { %583 = vmatmul.bf16.gmra.mxu0 %v2333_v18  ;;  %623 = vmatmul.bf16.gmra.mxu2 %v2341_v27 }
  0xcc   : > { %588 = vmatmul.bf16.gmra.mxu0 %v2334_v21  ;;  %628 = vmatmul.bf16.gmra.mxu2 %v2342_v45 }
  0xd9   : > { %v554_v28 = vpop.f32.mrf.mxu0 }
  0xda   : > { %v555_v29 = vadd.f32 %v2988_v25, %v554_v28 }
  0xdc   : > { %v634_v31 = vmax.f32 %v555_v29, 0.0 }
  0xde   : > { %v3000_v32 = vmin.f32 %v634_v31, 6.0  ;;  %v3058_v31 = vld [vmem:[#allocation8 + $0xa] ss:$0 sm:$0xff] }
  0xdf   : > { %v594_v40 = vpop.f32.mrf.mxu2 }
  0xe0   : > { %742 = vst [vmem:[#allocation2 + $0x19] sm:$0xff] %v3000_v32  ;;  %v1201_v14 = vmul.f32 %v3035_v5, %v3000_v32 }
  0xe1   : > { %v556_v34 = vpop.f32.mrf.mxu0 }
  0xe2   : > { %v557_v35 = vadd.f32 %v2988_v25, %v556_v34  ;;  %v908_v34 = vmul.f32 %v3015_v42, %v3000_v32 }
  0xe4   : > { %v635_v37 = vmax.f32 %v557_v35, 0.0 }
  0xe6   : > { %v3013_v41 = vmin.f32 %v635_v37, 6.0 }
  0xe7   : > { %v1068_v60 = vld [vmem:[#allocation2 + $0x18] sm:$0xff] }
  0xe8   : > { %743 = vst [vmem:[#allocation2 + $0x21] sm:$0xff] %v3013_v41  ;;  %v1103_v1 = vmul.f32 %v3027_v58, %v1068_v60  ;;  %v1202_v22 = vmul.f32 %v3035_v5, %v3013_v41  ;;  %v810_v27 = vmul.f32 %v3009_v38, %v1068_v60  ;;  %v909_v46 = vmul.f32 %v3015_v42, %v3013_v41 }
  0xe9   : > { %v559_v49 = vpop.f32.mrf.mxu0 }
  0xea   : > { %v560_v51 = vadd.f32 %v2988_v25, %v559_v49  ;;  %v1135_v11 = vadd.f32 %v1103_v1, %v1036_v0  ;;  %v940_v47 = vadd.f32 %v908_v34, %v810_v27 }
  0xec   : > { %v636_v54 = vmax.f32 %v560_v51, 0.0  ;;  %v1233_v18 = vadd.f32 %v1201_v14, %v1135_v11 }
  0xee   : > { %v3029_v61 = vmin.f32 %v636_v54, 6.0 }
  0xef   : > { %v1069_v3 = vld [vmem:[#allocation2 + $0x20] sm:$0xff] }
  0xf0   : > { %744 = vst [vmem:[#allocation2 + $0x31] sm:$0xff] %v3029_v61  ;;  %v1265_v7 = vld [vmem:[#allocation2 + $0x1a] sm:$0xff]  ;;  %v1104_v10 = vmul.f32 %v3027_v58, %v1069_v3  ;;  %v1266_v26 = vld [vmem:[#allocation2 + $0x22] sm:$0xff]  ;;  %v811_v33 = vmul.f32 %v3009_v38, %v1069_v3  ;;  %v1497_v39 = vmul.f32 %v3055_v24, %v3029_v61 }
  0xf1   : > { %v561_v2 = vpop.f32.mrf.mxu0  ;;  %v1299_v15 = vmul.f32 %v3037_v6, %v1265_v7  ;;  %v1006_v35 = vmul.f32 %v3017_v44, %v1265_v7  ;;  %v1300_v37 = vmul.f32 %v3037_v6, %v1266_v26  ;;  %v1007_v62 = vmul.f32 %v3017_v44, %v1266_v26 }
  0xf2   : > { %v562_v4 = vadd.f32 %v2988_v25, %v561_v2  ;;  %v1136_v17 = vadd.f32 %v1104_v10, %v1037_v9  ;;  %v941_v41 = vadd.f32 %v909_v46, %v811_v33  ;;  %v1203_v10 = vmul.f32 %v3035_v5, %v3029_v61 }
  0xf3   : > { %v1331_v23 = vadd.f32 %v1299_v15, %v1233_v18  ;;  %v1038_v55 = vadd.f32 %v1006_v35, %v940_v47  ;;  %v595_v26 = vadd.f32 %v2988_v25, %v594_v40  ;;  %v910_v35 = vmul.f32 %v3015_v42, %v3029_v61 }
  0xf4   : > { %v637_v8 = vmax.f32 %v562_v4, 0.0  ;;  %v1234_v29 = vadd.f32 %v1202_v22, %v1136_v17  ;;  %v1039_v7 = vadd.f32 %v1007_v62, %v941_v41 }
  0xf5   : > { %v650_v33 = vmax.f32 %v595_v26, 0.0 }
  0xf6   : > { %v3042_v13 = vmin.f32 %v637_v8, 6.0  ;;  %v1332_v32 = vadd.f32 %v1300_v37, %v1234_v29 }
  0xf7   : > { %v3047_v16 = vld [vmem:[#allocation2 + $0x30] sm:$0xff]  ;;  %v3112_v40 = vmin.f32 %v650_v33, 6.0 }
  0xf8   : > { %745 = vst [vmem:[#allocation2 + $0x39] sm:$0xff] %v3042_v13  ;;  %v1399_v19 = vmul.f32 %v3040_v12, %v3047_v16  ;;  %v1105_v48 = vmul.f32 %v3027_v58, %v3047_v16  ;;  %v1498_v59 = vmul.f32 %v3055_v24, %v3042_v13  ;;  %v812_v34 = vmul.f32 %v3009_v38, %v3047_v16 }
  0xf9   : > { %v564_v20 = vpop.f32.mrf.mxu0  ;;  %758 = vst [vmem:[#allocation2 + $0xd9] sm:$0xff] %v3112_v40 }
  0xfa   : > { %v565_v21 = vadd.f32 %v2988_v25, %v564_v20  ;;  %v1431_v30 = vadd.f32 %v1399_v19, %v1331_v23  ;;  %v1137_v0 = vadd.f32 %v1105_v48, %v1038_v55  ;;  %v1204_v23 = vmul.f32 %v3035_v5, %v3042_v13 }
  0xfb   : > { %v911_v55 = vmul.f32 %v3015_v42, %v3042_v13 }
  0xfc   : > { %v638_v28 = vmax.f32 %v565_v21, 0.0  ;;  %v1529_v50 = vadd.f32 %v1497_v39, %v1431_v30  ;;  %v1235_v19 = vadd.f32 %v1203_v10, %v1137_v0  ;;  %v596_v21 = vpop.f32.mrf.mxu2 }
  0xfe   : > { %v3064_v36 = vmin.f32 %v638_v28, 6.0 }
  0xff   : > { %v1365_v43 = vld [vmem:[#allocation2 + $0x38] sm:$0xff] }
 0x100   : > { %v1561_v45 = vld [vmem:[#allocation2 + $0x32] sm:$0xff]  ;;  %746 = vst [vmem:[#allocation2 + $0x49] sm:$0xff] %v3064_v36  ;;  %v1400_v49 = vmul.f32 %v3040_v12, %v1365_v43  ;;  %v3081_v54 = vld [vmem:[#allocation2 + $0x3a] sm:$0xff]  ;;  %v1106_v63 = vmul.f32 %v3027_v58, %v1365_v43  ;;  %v1499_v16 = vmul.f32 %v3055_v24, %v3064_v36 }
 0x101   : > { %v1595_v51 = vmul.f32 %v3058_v31, %v1561_v45  ;;  %v566_v53 = vpop.f32.mrf.mxu0  ;;  %v1596_v3 = vmul.f32 %v3058_v31, %v3081_v54  ;;  %v1301_v11 = vmul.f32 %v3037_v6, %v1561_v45  ;;  %v1302_v48 = vmul.f32 %v3037_v6, %v3081_v54 }
 0x102   : > { %v567_v56 = vadd.f32 %v2988_v25, %v566_v53  ;;  %v1432_v57 = vadd.f32 %v1400_v49, %v1332_v32  ;;  %v1138_v14 = vadd.f32 %v1106_v63, %v1039_v7  ;;  %v813_v32 = vmul.f32 %v3009_v38, %v1365_v43 }
 0x103   : > { %v1627_v60 = vadd.f32 %v1595_v51, %v1529_v50  ;;  %v1333_v29 = vadd.f32 %v1301_v11, %v1235_v19  ;;  %v1008_v49 = vmul.f32 %v3017_v44, %v1561_v45  ;;  %v597_v63 = vadd.f32 %v2988_v25, %v596_v21 }
 0x104   : > { %v639_v1 = vmax.f32 %v567_v56, 0.0  ;;  %v1530_v2 = vadd.f32 %v1498_v59, %v1432_v57  ;;  %v1236_v30 = vadd.f32 %v1204_v23, %v1138_v14  ;;  %v942_v56 = vadd.f32 %v910_v35, %v812_v34  ;;  %v599_v7 = vpop.f32.mrf.mxu2 }
 0x105   : > { %v1663_v4 = vadd.f32 %v3079_v52, %v1627_v60  ;;  %v943_v0 = vadd.f32 %v911_v55, %v813_v32  ;;  %v1009_v10 = vmul.f32 %v3017_v44, %v3081_v54  ;;  %v1205_v23 = vmul.f32 %v3035_v5, %v3064_v36 }
 0x106   : > { %v3091_v8 = vmin.f32 %v639_v1, 6.0  ;;  %v1628_v9 = vadd.f32 %v1596_v3, %v1530_v2  ;;  %v1334_v61 = vadd.f32 %v1302_v48, %v1236_v30  ;;  %v1040_v1 = vadd.f32 %v1008_v49, %v942_v56 }
 0x107   : > { %v3096_v15 = vld [vmem:[#allocation2 + $0x48] sm:$0xff]  ;;  %v1695_v18 = vmax.f32 %v1663_v4, 0.0  ;;  %v912_v34 = vmul.f32 %v3015_v42, %v3064_v36  ;;  %v600_v48 = vadd.f32 %v2988_v25, %v599_v7 }
 0x108   : > { %747 = vst [vmem:[#allocation2 + $0x51] sm:$0xff] %v3091_v8  ;;  %v1664_v17 = vadd.f32 %v3079_v52, %v1628_v9  ;;  %v1401_v20 = vmul.f32 %v3040_v12, %v3096_v15  ;;  %v1107_v43 = vmul.f32 %v3027_v58, %v3096_v15  ;;  %v1500_v3 = vmul.f32 %v3055_v24, %v3091_v8 }
 0x109   : > { %v569_v22 = vpop.f32.mrf.mxu0  ;;  %v1727_v39 = vmin.f32 %v1695_v18, 6.0  ;;  %v651_v9 = vmax.f32 %v597_v63, 0.0  ;;  %v913_v32 = vmul.f32 %v3015_v42, %v3091_v8  ;;  %v652_v55 = vmax.f32 %v600_v48, 0.0 }
 0x10a   : > { %v570_v27 = vadd.f32 %v2988_v25, %v569_v22  ;;  %v1696_v28 = vmax.f32 %v1664_v17, 0.0  ;;  %v1433_v47 = vadd.f32 %v1401_v20, %v1333_v29  ;;  %v1139_v14 = vadd.f32 %v1107_v43, %v1040_v1 }
 0x10b   : > { %v3137_v21 = vmin.f32 %v651_v9, 6.0  ;;  %v1041_v22 = vadd.f32 %v1009_v10, %v943_v0  ;;  %v3161_v0 = vmin.f32 %v652_v55, 6.0 }
 0x10c   : > { %v640_v37 = vmax.f32 %v570_v27, 0.0  ;;  %v1728_v46 = vmin.f32 %v1696_v28, 6.0  ;;  %v1531_v57 = vadd.f32 %v1499_v16, %v1433_v47  ;;  %v814_v28 = vmul.f32 %v3009_v38, %v3096_v15  ;;  %v601_v16 = vpop.f32.mrf.mxu2 }
 0x10d   : > { %759 = vst [vmem:[#allocation2 + $0xe1] sm:$0xff] %v3137_v21  ;;  %v1206_v15 = vmul.f32 %v3035_v5, %v3091_v8 }
 0x10e   : > { %v3116_v50 = vmin.f32 %v640_v37, 6.0  ;;  %v1759_v51 = vpack.c.bf16 %v1728_v46, %v1727_v39  ;;  %v1237_v39 = vadd.f32 %v1205_v23, %v1139_v14  ;;  %760 = vst [vmem:[#allocation2 + $0xf1] sm:$0xff] %v3161_v0 }
 0x10f   : > { %v1367_v53 = vld [vmem:[#allocation2 + $0x50] sm:$0xff] }
 0x110   : > { %v1563_v41 = vld [vmem:[#allocation2 + $0x4a] sm:$0xff]  ;;  %748 = vst [vmem:[#allocation2 + $0x61] sm:$0xff] %v3116_v50  ;;  %1851 = vmatmul.bf16.vlgmr.msra.gmra.mxu1 %v1759_v51  ;;  %v1402_v45 = vmul.f32 %v3040_v12, %v1367_v53  ;;  %v1564_v62 = vld [vmem:[#allocation2 + $0x52] sm:$0xff]  ;;  %v1108_v11 = vmul.f32 %v3027_v58, %v1367_v53  ;;  %v815_v33 = vmul.f32 %v3009_v38, %v1367_v53 }
 0x111   : > { %v1597_v59 = vmul.f32 %v3058_v31, %v1563_v41  ;;  %v571_v60 = vpop.f32.mrf.mxu0  ;;  %v1598_v19 = vmul.f32 %v3058_v31, %v1564_v62  ;;  %v1303_v54 = vmul.f32 %v3037_v6, %v1563_v41  ;;  %v1010_v43 = vmul.f32 %v3017_v44, %v1563_v41 }
 0x112   : > { %v572_v13 = vadd.f32 %v2988_v25, %v571_v60  ;;  %v1434_v2 = vadd.f32 %v1402_v45, %v1334_v61  ;;  %v1140_v29 = vadd.f32 %v1108_v11, %v1041_v22  ;;  %v944_v61 = vadd.f32 %v912_v34, %v814_v28 }
 0x113   : > { %v1629_v4 = vadd.f32 %v1597_v59, %v1531_v57  ;;  %v1335_v51 = vadd.f32 %v1303_v54, %v1237_v39  ;;  %v945_v56 = vadd.f32 %v913_v32, %v815_v33  ;;  %v1304_v63 = vmul.f32 %v3037_v6, %v1564_v62 }
 0x114   : > { %v641_v17 = vmax.f32 %v572_v13, 0.0  ;;  %v1532_v18 = vadd.f32 %v1500_v3, %v1434_v2  ;;  %v1238_v53 = vadd.f32 %v1206_v15, %v1140_v29  ;;  %v1011_v8 = vmul.f32 %v3017_v44, %v1564_v62 }
 0x115   : > { %v1665_v20 = vadd.f32 %v3079_v52, %v1629_v4  ;;  %v1501_v3 = vmul.f32 %v3055_v24, %v3116_v50  ;;  %v1042_v9 = vadd.f32 %v1010_v43, %v944_v61  ;;  %v1207_v11 = vmul.f32 %v3035_v5, %v3116_v50 }
 0x116   : > { %v3141_v26 = vmin.f32 %v641_v17, 6.0  ;;  %v1630_v27 = vadd.f32 %v1598_v19, %v1532_v18  ;;  %v1336_v4 = vadd.f32 %v1304_v63, %v1238_v53  ;;  %v1043_v10 = vadd.f32 %v1011_v8, %v945_v56 }
 0x117   : > { %v1368_v30 = vld [vmem:[#allocation2 + $0x60] sm:$0xff]  ;;  %v1697_v37 = vmax.f32 %v1665_v20, 0.0  ;;  %v602_v20 = vadd.f32 %v2988_v25, %v601_v16 }
 0x118   : > { %749 = vst [vmem:[#allocation2 + $0x69] sm:$0xff] %v3141_v26  ;;  %v1666_v35 = vadd.f32 %v3079_v52, %v1630_v27  ;;  %v1403_v46 = vmul.f32 %v3040_v12, %v1368_v30  ;;  %v1109_v1 = vmul.f32 %v3027_v58, %v1368_v30  ;;  %v914_v27 = vmul.f32 %v3015_v42, %v3116_v50  ;;  %v604_v50 = vpop.f32.mrf.mxu2 }
 0x119   : > { %v574_v47 = vpop.f32.mrf.mxu0  ;;  %v1729_v57 = vmin.f32 %v1697_v37, 6.0  ;;  %v1502_v29 = vmul.f32 %v3055_v24, %v3141_v26  ;;  %v816_v39 = vmul.f32 %v3009_v38, %v1368_v30  ;;  %v1208_v53 = vmul.f32 %v3035_v5, %v3141_v26 }
 0x11a   : > { %v575_v49 = vadd.f32 %v2988_v25, %v574_v47  ;;  %v1698_v36 = vmax.f32 %v1666_v35, 0.0  ;;  %v1435_v60 = vadd.f32 %v1403_v46, %v1335_v51  ;;  %v1141_v23 = vadd.f32 %v1109_v1, %v1042_v9 }
 0x11b   : > { %v653_v35 = vmax.f32 %v602_v20, 0.0  ;;  %v915_v43 = vmul.f32 %v3015_v42, %v3141_v26  ;;  %v605_v1 = vadd.f32 %v2988_v25, %v604_v50 }
 0x11c   : > { %v642_v45 = vmax.f32 %v575_v49, 0.0  ;;  %v1730_v59 = vmin.f32 %v1698_v36, 6.0  ;;  %v1533_v14 = vadd.f32 %v1501_v3, %v1435_v60  ;;  %v1239_v49 = vadd.f32 %v1207_v11, %v1141_v23 }
 0x11d   : > { %v3186_v32 = vmin.f32 %v653_v35, 6.0  ;;  %v654_v11 = vmax.f32 %v605_v1, 0.0 }
 0x11e   : > { %v3165_v13 = vmin.f32 %v642_v45, 6.0  ;;  %v1760_v2 = vpack.c.bf16 %v1730_v59, %v1729_v57  ;;  %v946_v45 = vadd.f32 %v914_v27, %v816_v39 }
 0x11f   : > { %v1369_v41 = vld [vmem:[#allocation2 + $0x68] sm:$0xff]  ;;  %761 = vst [vmem:[#allocation2 + $0xf9] sm:$0xff] %v3186_v32  ;;  %v3205_v27 = vmin.f32 %v654_v11, 6.0 }
 0x120   : > { %v1565_v7 = vld [vmem:[#allocation2 + $0x62] sm:$0xff]  ;;  %750 = vst [vmem:[#allocation2 + $0x79] sm:$0xff] %v3165_v13  ;;  %1856 = vmatmul.bf16.gmra.mxu1 %v1760_v2  ;;  %v1404_v62 = vmul.f32 %v3040_v12, %v1369_v41  ;;  %v1566_v17 = vld [vmem:[#allocation2 + $0x6a] sm:$0xff]  ;;  %v1110_v22 = vmul.f32 %v3027_v58, %v1369_v41  ;;  %v817_v36 = vmul.f32 %v3009_v38, %v1369_v41  ;;  %v606_v23 = vpop.f32.mrf.mxu2 }
 0x121   : > { %v1599_v18 = vmul.f32 %v3058_v31, %v1565_v7  ;;  %v576_v19 = vpop.f32.mrf.mxu0  ;;  %v1600_v34 = vmul.f32 %v3058_v31, %v1566_v17  ;;  %v1305_v37 = vmul.f32 %v3037_v6, %v1565_v7  ;;  %v1012_v51 = vmul.f32 %v3017_v44, %v1565_v7  ;;  %3916 = vst [vmem:[#allocation16_spill] sm:$0xff] %v3205_v27 }
 0x122   : > { %v577_v54 = vadd.f32 %v2988_v25, %v576_v19  ;;  %v1436_v28 = vadd.f32 %v1404_v62, %v1336_v4  ;;  %v1142_v48 = vadd.f32 %v1110_v22, %v1043_v10  ;;  %v1306_v30 = vmul.f32 %v3037_v6, %v1566_v17  ;;  %762 = vst [vmem:[#allocation2 + $0x109] sm:$0xff] %v3205_v27 }
 0x123   : > { %v1631_v33 = vadd.f32 %v1599_v18, %v1533_v14  ;;  %v1337_v55 = vadd.f32 %v1305_v37, %v1239_v49  ;;  %v947_v2 = vadd.f32 %v915_v43, %v817_v36  ;;  %v1044_v3 = vadd.f32 %v1012_v51, %v946_v45 }
 0x124   : > { %v643_v46 = vmax.f32 %v577_v54, 0.0  ;;  %v1534_v47 = vadd.f32 %v1502_v29, %v1436_v28  ;;  %v1240_v60 = vadd.f32 %v1208_v53, %v1142_v48  ;;  %v1503_v26 = vmul.f32 %v3055_v24, %v3165_v13 }
 0x125   : > { %v1667_v15 = vadd.f32 %v3079_v52, %v1631_v33  ;;  %v1013_v9 = vmul.f32 %v3017_v44, %v1566_v17  ;;  %v1209_v28 = vmul.f32 %v3035_v5, %v3165_v13  ;;  %v916_v29 = vmul.f32 %v3015_v42, %v3165_v13 }
 0x126   : > { %v675_v16 = vmin.f32 %v643_v46, 6.0  ;;  %v1632_v61 = vadd.f32 %v1600_v34, %v1534_v47  ;;  %v1338_v22 = vadd.f32 %v1306_v30, %v1240_v60 }
 0x127   : > { %v1370_v56 = vld [vmem:[#allocation2 + $0x78] sm:$0xff]  ;;  %v1699_v59 = vmax.f32 %v1667_v15, 0.0  ;;  %v1045_v54 = vadd.f32 %v1013_v9, %v947_v2 }
 0x128   : > { %751 = vst [vmem:[#allocation2 + $0x81] sm:$0xff] %v675_v16  ;;  %v1668_v57 = vadd.f32 %v3079_v52, %v1632_v61  ;;  %v1405_v63 = vmul.f32 %v3040_v12, %v1370_v56  ;;  %v1111_v4 = vmul.f32 %v3027_v58, %v1370_v56  ;;  %v818_v14 = vmul.f32 %v3009_v38, %v1370_v56 }
 0x129   : > { %v579_v8 = vpop.f32.mrf.mxu0  ;;  %v1731_v19 = vmin.f32 %v1699_v59, 6.0  ;;  %v1504_v34 = vmul.f32 %v3055_v24, %v675_v16  ;;  %v1210_v35 = vmul.f32 %v3035_v5, %v675_v16  ;;  %v917_v48 = vmul.f32 %v3015_v42, %v675_v16 }
 0x12a   : > { %v580_v41 = vadd.f32 %v2988_v25, %v579_v8  ;;  %v1700_v7 = vmax.f32 %v1668_v57, 0.0  ;;  %v1437_v10 = vadd.f32 %v1405_v63, %v1337_v55  ;;  %v1143_v62 = vadd.f32 %v1111_v4, %v1044_v3  ;;  %v609_v3 = vpop.f32.mrf.mxu2 }
 0x12b   : > { %v948_v50 = vadd.f32 %v916_v29, %v818_v14  ;;  %v607_v61 = vadd.f32 %v2988_v25, %v606_v23 }
 0x12c   : > { %v644_v18 = vmax.f32 %v580_v41, 0.0  ;;  %v1732_v20 = vmin.f32 %v1700_v7, 6.0  ;;  %v1535_v39 = vadd.f32 %v1503_v26, %v1437_v10  ;;  %v1241_v15 = vadd.f32 %v1209_v28, %v1143_v62 }
 0x12d   : > { %v655_v57 = vmax.f32 %v607_v61, 0.0 }
 0x12e   : > { %v676_v17 = vmin.f32 %v644_v18, 6.0  ;;  %v1761_v33 = vpack.c.bf16 %v1732_v20, %v1731_v19 }
 0x12f   : > { %v1371_v37 = vld [vmem:[#allocation2 + $0x80] sm:$0xff]  ;;  %v3227_v41 = vmin.f32 %v655_v57, 6.0 }
 0x130   : > { %v1567_v46 = vld [vmem:[#allocation2 + $0x7a] sm:$0xff]  ;;  %v1568_v47 = vld [vmem:[#allocation2 + $0x82] sm:$0xff]  ;;  %752 = vst [vmem:[#allocation2 + $0x91] sm:$0xff] %v676_v17  ;;  %1861 = vmatmul.bf16.gmra.mxu1 %v1761_v33  ;;  %v1406_v13 = vmul.f32 %v3040_v12, %v1371_v37  ;;  %v1112_v53 = vmul.f32 %v3027_v58, %v1371_v37  ;;  %v1505_v45 = vmul.f32 %v3055_v24, %v676_v17 }
 0x131   : > { %v1601_v49 = vmul.f32 %v3058_v31, %v1567_v46  ;;  %v1602_v36 = vmul.f32 %v3058_v31, %v1568_v47  ;;  %v581_v51 = vpop.f32.mrf.mxu0  ;;  %v1307_v30 = vmul.f32 %v3037_v6, %v1567_v46  ;;  %v1308_v55 = vmul.f32 %v3037_v6, %v1568_v47  ;;  %3917 = vst [vmem:[#allocation17_spill] sm:$0xff] %v3227_v41  ;;  %v3256_v57 = vld [vmem:[#allocation2 + $0xe2] sm:$0xff] }
 0x132   : > { %v582_v16 = vadd.f32 %v2988_v25, %v581_v51  ;;  %v1438_v56 = vadd.f32 %v1406_v13, %v1338_v22  ;;  %v1144_v59 = vadd.f32 %v1112_v53, %v1045_v54  ;;  %v819_v63 = vmul.f32 %v3009_v38, %v1371_v37  ;;  %763 = vst [vmem:[#allocation2 + $0x111] sm:$0xff] %v3227_v41  ;;  %v3244_v51 = vld [vmem:[#allocation2 + $0xe0] sm:$0xff] }
 0x133   : > { %v1633_v43 = vadd.f32 %v1601_v49, %v1535_v39  ;;  %v1339_v60 = vadd.f32 %v1307_v30, %v1241_v15  ;;  %v1014_v4 = vmul.f32 %v3017_v44, %v1567_v46  ;;  %v1015_v9 = vmul.f32 %v3017_v44, %v1568_v47  ;;  %v3250_v53 = vld [vmem:[#allocation2 + $0xda] sm:$0xff] }
 0x134   : > { %v645_v8 = vmax.f32 %v582_v16, 0.0  ;;  %v1536_v1 = vadd.f32 %v1504_v34, %v1438_v56  ;;  %v1242_v7 = vadd.f32 %v1210_v35, %v1144_v59  ;;  %v949_v26 = vadd.f32 %v917_v48, %v819_v63  ;;  %v611_v56 = vpop.f32.mrf.mxu2 }
 0x135   : > { %v1669_v2 = vadd.f32 %v3079_v52, %v1633_v43  ;;  %v1046_v14 = vadd.f32 %v1014_v4, %v948_v50  ;;  %v1211_v22 = vmul.f32 %v3035_v5, %v676_v17  ;;  %v918_v23 = vmul.f32 %v3015_v42, %v676_v17  ;;  %v3242_v50 = vld [vmem:[#allocation2 + $0xd8] sm:$0xff] }
 0x136   : > { %v677_v10 = vmin.f32 %v645_v8, 6.0  ;;  %v1634_v11 = vadd.f32 %v1602_v36, %v1536_v1  ;;  %v1340_v18 = vadd.f32 %v1308_v55, %v1242_v7  ;;  %v1047_v20 = vadd.f32 %v1015_v9, %v949_v26 }
 0x137   : > { %v1701_v62 = vmax.f32 %v1669_v2, 0.0  ;;  %v1372_v19 = vld [vmem:[#allocation2 + $0x90] sm:$0xff]  ;;  %v610_v35 = vadd.f32 %v2988_v25, %v609_v3  ;;  %v3248_v61 = vmul.f32 %v3027_v58, %v3242_v50  ;;  %v3254_v43 = vmul.f32 %v3027_v58, %v3244_v51 }
 0x138   : > { %753 = vst [vmem:[#allocation2 + $0x99] sm:$0xff] %v677_v10  ;;  %v1670_v54 = vadd.f32 %v3079_v52, %v1634_v11  ;;  %v1407_v29 = vmul.f32 %v3040_v12, %v1372_v19  ;;  %v1506_v33 = vmul.f32 %v3055_v24, %v677_v10  ;;  %v1113_v37 = vmul.f32 %v3027_v58, %v1372_v19 }
 0x139   : > { %v1733_v28 = vmin.f32 %v1701_v62, 6.0  ;;  %v584_v34 = vpop.f32.mrf.mxu0  ;;  %v1212_v39 = vmul.f32 %v3035_v5, %v677_v10  ;;  %v820_v46 = vmul.f32 %v3009_v38, %v1372_v19  ;;  %v919_v48 = vmul.f32 %v3015_v42, %v677_v10 }
 0x13a   : > { %v585_v47 = vadd.f32 %v2988_v25, %v584_v34  ;;  %v1702_v17 = vmax.f32 %v1670_v54, 0.0  ;;  %v1439_v15 = vadd.f32 %v1407_v29, %v1339_v60  ;;  %v656_v13 = vmax.f32 %v610_v35, 0.0 }
 0x13b   : > { %v1145_v49 = vadd.f32 %v1113_v37, %v1046_v14  ;;  %v950_v36 = vadd.f32 %v918_v23, %v820_v46  ;;  %v612_v60 = vadd.f32 %v2988_v25, %v611_v56  ;;  %v3263_v8 = vmul.f32 %v3035_v5, %v3112_v40 }
 0x13c   : > { %v646_v30 = vmax.f32 %v585_v47, 0.0  ;;  %v1734_v55 = vmin.f32 %v1702_v17, 6.0  ;;  %v1537_v16 = vadd.f32 %v1505_v45, %v1439_v15  ;;  %v3258_v59 = vmin.f32 %v656_v13, 6.0 }
 0x13d   : > { %v1243_v63 = vadd.f32 %v1211_v22, %v1145_v49  ;;  %v3269_v45 = vmul.f32 %v3035_v5, %v3137_v21  ;;  %v3273_v3 = vmul.f32 %v3037_v6, %v3250_v53  ;;  %v657_v9 = vmax.f32 %v612_v60, 0.0  ;;  %v614_v60 = vpop.f32.mrf.mxu2 }
 0x13e   : > { %3918 = vst [vmem:[#allocation18_spill] sm:$0xff] %v3258_v59  ;;  %v3265_v1 = vmin.f32 %v646_v30, 6.0  ;;  %v1762_v2 = vpack.c.bf16 %v1734_v55, %v1733_v28  ;;  %v3278_v10 = vmul.f32 %v3037_v6, %v3256_v57  ;;  %v3282_v11 = vmul.f32 %v3040_v12, %v3242_v50 }
 0x13f   : > { %v1373_v4 = vld [vmem:[#allocation2 + $0x98] sm:$0xff]  ;;  %764 = vst [vmem:[#allocation2 + $0x121] sm:$0xff] %v3258_v59  ;;  %v3286_v62 = vmul.f32 %v3040_v12, %v3244_v51  ;;  %v3292_v54 = vmin.f32 %v657_v9, 6.0  ;;  %v3356_v41 = vmul.f32 %v3055_v24, %v3112_v40 }
 0x140   : > { %v1569_v7 = vld [vmem:[#allocation2 + $0x92] sm:$0xff]  ;;  %v1570_v26 = vld [vmem:[#allocation2 + $0x9a] sm:$0xff]  ;;  %754 = vst [vmem:[#allocation2 + $0xa9] sm:$0xff] %v3265_v1  ;;  %1866 = vmatmul.bf16.gmra.mxu1 %v1762_v2  ;;  %v1408_v14 = vmul.f32 %v3040_v12, %v1373_v4  ;;  %v1114_v28 = vmul.f32 %v3027_v58, %v1373_v4  ;;  %v1507_v47 = vmul.f32 %v3055_v24, %v3265_v1 }
 0x141   : > { %v1603_v19 = vmul.f32 %v3058_v31, %v1569_v7  ;;  %v1604_v22 = vmul.f32 %v3058_v31, %v1570_v26  ;;  %v586_v23 = vpop.f32.mrf.mxu0  ;;  %3919 = vst [vmem:[#allocation19_spill] sm:$0xff] %v3292_v54  ;;  %v1309_v29 = vmul.f32 %v3037_v6, %v1569_v7  ;;  %v1310_v34 = vmul.f32 %v3037_v6, %v1570_v26 }
 0x142   : > { %v587_v35 = vadd.f32 %v2988_v25, %v586_v23  ;;  %v1440_v37 = vadd.f32 %v1408_v14, %v1340_v18  ;;  %765 = vst [vmem:[#allocation2 + $0x129] sm:$0xff] %v3292_v54  ;;  %v1146_v17 = vadd.f32 %v1114_v28, %v1047_v20  ;;  %v821_v13 = vmul.f32 %v3009_v38, %v1373_v4 }
 0x143   : > { %v1635_v46 = vadd.f32 %v1603_v19, %v1537_v16  ;;  %v1341_v15 = vadd.f32 %v1309_v29, %v1243_v63  ;;  %v1016_v49 = vmul.f32 %v3017_v44, %v1569_v7  ;;  %v1017_v2 = vmul.f32 %v3017_v44, %v1570_v26 }
 0x144   : > { %v647_v30 = vmax.f32 %v587_v35, 0.0  ;;  %v1538_v55 = vadd.f32 %v1506_v33, %v1440_v37  ;;  %v1244_v18 = vadd.f32 %v1212_v39, %v1146_v17  ;;  %v615_v16 = vadd.f32 %v2988_v25, %v614_v60  ;;  %v3321_v17 = vld [vmem:[#allocation2 + $0xf8] sm:$0xff] }
 0x145   : > { %v1671_v56 = vadd.f32 %v3079_v52, %v1635_v46  ;;  %v951_v9 = vadd.f32 %v919_v48, %v821_v13  ;;  %v1048_v14 = vadd.f32 %v1016_v49, %v950_v36  ;;  %v1213_v63 = vmul.f32 %v3035_v5, %v3265_v1  ;;  %v3332_v60 = vld [vmem:[#allocation2 + $0xf2] sm:$0xff] }
 0x146   : > { %v679_v19 = vmin.f32 %v647_v30, 6.0  ;;  %v1636_v23 = vadd.f32 %v1604_v22, %v1538_v55  ;;  %v1342_v4 = vadd.f32 %v1310_v34, %v1244_v18  ;;  %v658_v28 = vmax.f32 %v615_v16, 0.0  ;;  %v3315_v22 = vld [vmem:[#allocation2 + $0xf0] sm:$0xff]  ;;  %3923 = vst [vmem:[#allocation23_spill] sm:$0xff] %v3332_v60 }
 0x147   : > { %v1703_v20 = vmax.f32 %v1671_v56, 0.0  ;;  %v1374_v7 = vld [vmem:[#allocation2 + $0xa8] sm:$0xff]  ;;  %v1049_v33 = vadd.f32 %v1017_v2, %v951_v9  ;;  %v3310_v29 = vmul.f32 %v3055_v24, %v3161_v0  ;;  %v3325_v13 = vmul.f32 %v3040_v12, %v3315_v22  ;;  %v3334_v2 = vld [vmem:[#allocation2 + $0xfa] sm:$0xff] }
 0x148   : > { %755 = vst [vmem:[#allocation2 + $0xb1] sm:$0xff] %v679_v19  ;;  %v1672_v39 = vadd.f32 %v3079_v52, %v1636_v23  ;;  %v1409_v48 = vmul.f32 %v3040_v12, %v1374_v7  ;;  %v1508_v36 = vmul.f32 %v3055_v24, %v679_v19  ;;  %v3317_v37 = vmin.f32 %v658_v28, 6.0 }
 0x149   : > { %3920 = vst [vmem:[#allocation20_spill] sm:$0xff] %v3310_v29  ;;  %v1735_v26 = vmin.f32 %v1703_v20, 6.0  ;;  %v589_v35 = vpop.f32.mrf.mxu0  ;;  %v1115_v34 = vmul.f32 %v3027_v58, %v1374_v7  ;;  %v1214_v46 = vmul.f32 %v3035_v5, %v679_v19  ;;  %v3330_v56 = vmul.f32 %v3040_v12, %v3321_v17 }
 0x14a   : > { %3921 = vst [vmem:[#allocation21_spill] sm:$0xff] %v3317_v37  ;;  %v590_v49 = vadd.f32 %v2988_v25, %v589_v35  ;;  %v1704_v30 = vmax.f32 %v1672_v39, 0.0  ;;  %v1441_v55 = vadd.f32 %v1409_v48, %v1341_v15  ;;  %v3339_v16 = vmul.f32 %v3055_v24, %v3186_v32  ;;  %v616_v39 = vpop.f32.mrf.mxu2 }
 0x14b   : > { %3922 = vst [vmem:[#allocation22_spill] sm:$0xff] %v3330_v56  ;;  %v1147_v18 = vadd.f32 %v1115_v34, %v1048_v14  ;;  %v3343_v9 = vmul.f32 %v3058_v31, %v3332_v60  ;;  %v3347_v15 = vmul.f32 %v3058_v31, %v3334_v2  ;;  %v822_v48 = vmul.f32 %v3009_v38, %v1374_v7 }
 0x14c   : > { %3924 = vst [vmem:[#allocation24_spill] sm:$0xff] %v3334_v2  ;;  %v648_v23 = vmax.f32 %v590_v49, 0.0  ;;  %v1736_v20 = vmin.f32 %v1704_v30, 6.0  ;;  %v1539_v28 = vadd.f32 %v1507_v47, %v1441_v55  ;;  %v617_v14 = vadd.f32 %v2988_v25, %v616_v39 }
 0x14d   : > { %766 = vst [vmem:[#allocation2 + $0x139] sm:$0xff] %v3317_v37  ;;  %v1245_v35 = vadd.f32 %v1213_v63, %v1147_v18  ;;  %v920_v34 = vmul.f32 %v3015_v42, %v3265_v1  ;;  %v921_v37 = vmul.f32 %v3015_v42, %v679_v19  ;;  %v3360_v47 = vmul.f32 %v3055_v24, %v3137_v21 }
 0x14e   : > { %3925 = vst [vmem:[#allocation25_spill] sm:$0xff] %v3339_v16  ;;  %v680_v54 = vmin.f32 %v648_v23, 6.0  ;;  %v1763_v59 = vpack.c.bf16 %v1736_v20, %v1735_v26  ;;  %v659_v55 = vmax.f32 %v617_v14, 0.0  ;;  %v3364_v1 = vmul.f32 %v3058_v31, %v3250_v53 }
 0x14f   : > { %3926 = vst [vmem:[#allocation26_spill] sm:$0xff] %v3343_v9  ;;  %v1375_v49 = vld [vmem:[#allocation2 + $0xb0] sm:$0xff]  ;;  %v952_v63 = vadd.f32 %v920_v34, %v822_v48  ;;  %v3368_v19 = vmul.f32 %v3058_v31, %v3256_v57 }
 0x150   : > { %3927 = vst [vmem:[#allocation27_spill] sm:$0xff] %v3347_v15  ;;  %v1571_v7 = vld [vmem:[#allocation2 + $0xaa] sm:$0xff]  ;;  %v1572_v30 = vld [vmem:[#allocation2 + $0xb2] sm:$0xff]  ;;  %1871 = vmatmul.bf16.gmra.mxu1 %v1763_v59  ;;  %v1410_v40 = vmul.f32 %v3040_v12, %v1375_v49  ;;  %v3373_v23 = vmin.f32 %v659_v55, 6.0  ;;  %v1116_v20 = vmul.f32 %v3027_v58, %v1375_v49  ;;  %v1509_v59 = vmul.f32 %v3055_v24, %v680_v54 }
 0x151   : > { %3928 = vst [vmem:[#allocation28_spill] sm:$0xff] %v3368_v19  ;;  %v1605_v21 = vmul.f32 %v3058_v31, %v1571_v7  ;;  %v1606_v26 = vmul.f32 %v3058_v31, %v1572_v30  ;;  %v591_v18 = vpop.f32.mrf.mxu0  ;;  %v1311_v39 = vmul.f32 %v3037_v6, %v1571_v7  ;;  %v1312_v48 = vmul.f32 %v3037_v6, %v1572_v30 }
 0x152   : > { %756 = vst [vmem:[#allocation2 + $0xc1] sm:$0xff] %v680_v54  ;;  %v592_v14 = vadd.f32 %v2988_v25, %v591_v18  ;;  %v1442_v34 = vadd.f32 %v1410_v40, %v1342_v4  ;;  %v1148_v27 = vadd.f32 %v1116_v20, %v1049_v33  ;;  %v922_v16 = vmul.f32 %v3015_v42, %v680_v54  ;;  %v619_v2 = vpop.f32.mrf.mxu2 }
 0x153   : > { %3929 = vst [vmem:[#allocation29_spill] sm:$0xff] %v3373_v23  ;;  %v1637_v15 = vadd.f32 %v1605_v21, %v1539_v28  ;;  %v1343_v9 = vadd.f32 %v1311_v39, %v1245_v35  ;;  %v823_v55 = vmul.f32 %v3009_v38, %v1375_v49  ;;  %v1018_v60 = vmul.f32 %v3017_v44, %v1571_v7 }
 0x154   : > { %767 = vst [vmem:[#allocation2 + $0x141] sm:$0xff] %v3373_v23  ;;  %v649_v19 = vmax.f32 %v592_v14, 0.0  ;;  %v1540_v29 = vadd.f32 %v1508_v36, %v1442_v34  ;;  %v1246_v18 = vadd.f32 %v1214_v46, %v1148_v27  ;;  %v620_v4 = vadd.f32 %v2988_v25, %v619_v2  ;;  %v891_v2 = vld [vmem:[#allocation2 + $0xe1] sm:$0xff] }
 0x155   : > { %v1673_v56 = vadd.f32 %v3079_v52, %v1637_v15  ;;  %v953_v28 = vadd.f32 %v921_v37, %v823_v55  ;;  %v1019_v40 = vmul.f32 %v3017_v44, %v1572_v30  ;;  %v1050_v20 = vadd.f32 %v1018_v60, %v952_v63  ;;  %v890_v37 = vld [vmem:[#allocation2 + $0xd9] sm:$0xff] }
 0x156   : > { %v681_v21 = vmin.f32 %v649_v19, 6.0  ;;  %v1638_v33 = vadd.f32 %v1606_v26, %v1540_v29  ;;  %v1344_v39 = vadd.f32 %v1312_v48, %v1246_v18  ;;  %v660_v49 = vmax.f32 %v620_v4, 0.0 }
 0x157   : > { %v1705_v35 = vmax.f32 %v1673_v56, 0.0  ;;  %v1051_v14 = vadd.f32 %v1019_v40, %v953_v28  ;;  %v1215_v36 = vmul.f32 %v3035_v5, %v680_v54  ;;  %v826_v19 = vmul.f32 %v3009_v38, %v3242_v50  ;;  %v3409_v50 = vld [vmem:[%s3882_s2] ss:$0 sm:$0xff] }
 0x158   : > { %757 = vst [vmem:[#allocation2 + $0xc9] sm:$0xff] %v681_v21  ;;  %v1674_v15 = vadd.f32 %v3079_v52, %v1638_v33  ;;  %v1510_v25 = vmul.f32 %v3055_v24, %v681_v21  ;;  %v3391_v46 = vmin.f32 %v660_v49, 6.0  ;;  %v923_v56 = vmul.f32 %v3015_v42, %v681_v21 }
 0x159   : > { %v1376_v23 = vld [vmem:[#allocation2 + $0xc0] sm:$0xff]  ;;  %v1737_v7 = vmin.f32 %v1705_v35, 6.0  ;;  %v1216_v63 = vmul.f32 %v3035_v5, %v681_v21  ;;  %v827_v48 = vmul.f32 %v3009_v38, %v3244_v51  ;;  %v924_v34 = vmul.f32 %v3015_v42, %v890_v37 }
 0x15a   : > { %v1411_v27 = vmul.f32 %v3040_v12, %v1376_v23  ;;  %v824_v29 = vmul.f32 %v3009_v38, %v1376_v23  ;;  %v1117_v60 = vmul.f32 %v3027_v58, %v1376_v23  ;;  %v1706_v30 = vmax.f32 %v1674_v15, 0.0  ;;  %768 = vst [vmem:[#allocation2 + $0x151] sm:$0xff] %v3391_v46  ;;  %v621_v23 = vpop.f32.mrf.mxu2 }
 0x15b   : > { %v925_v4 = vmul.f32 %v3015_v42, %v891_v2  ;;  %v956_v40 = vadd.f32 %v924_v34, %v826_v19  ;;  %v1023_v38 = vmul.f32 %v3017_v44, %v3256_v57  ;;  %v1121_v42 = vmul.f32 %v3027_v58, %v3315_v22 }
 0x15c   : > { %v1443_v54 = vadd.f32 %v1411_v27, %v1343_v9  ;;  %v954_v24 = vadd.f32 %v922_v16, %v824_v29  ;;  %v1149_v26 = vadd.f32 %v1117_v60, %v1050_v20  ;;  %v1738_v55 = vmin.f32 %v1706_v30, 6.0  ;;  %v3425_v27 = vld [vmem:[#allocation8] ss:$0 sm:$0xff]  ;;  %v3428_v29 = vld [vmem:[#allocation8 + $0x2] ss:$0 sm:$0xff] }
 0x15d   : > { %v1022_v9 = vmul.f32 %v3017_v44, %v3250_v53  ;;  %v622_v16 = vadd.f32 %v3409_v50, %v621_v23  ;;  %v1122_v53 = vmul.f32 %v3027_v58, %v3321_v17  ;;  %v1220_v15 = vmul.f32 %v3035_v5, %v3186_v32 }
 0x15e   : > { %v1541_v18 = vadd.f32 %v1509_v59, %v1443_v54  ;;  %v1247_v28 = vadd.f32 %v1215_v36, %v1149_v26  ;;  %v1764_v51 = vpack.c.bf16 %v1738_v55, %v1737_v7  ;;  %v957_v59 = vadd.f32 %v925_v4, %v827_v48 }
 0x15f   : > { %v1377_v21 = vld [vmem:[#allocation2 + $0xc8] sm:$0xff]  ;;  %v661_v20 = vmax.f32 %v622_v16, 0.0  ;;  %v1054_v49 = vadd.f32 %v1022_v9, %v956_v40  ;;  %v1219_v36 = vmul.f32 %v3035_v5, %v3161_v0 }
 0x160   : > { %v1573_v33 = vld [vmem:[#allocation2 + $0xc2] sm:$0xff]  ;;  %v1574_v35 = vld [vmem:[#allocation2 + $0xca] sm:$0xff]  ;;  %1876 = vmatmul.bf16.gmra.mxu1 %v1764_v51  ;;  %v1412_v44 = vmul.f32 %v3040_v12, %v1377_v21  ;;  %v825_v37 = vmul.f32 %v3425_v27, %v1377_v21  ;;  %v1118_v5 = vmul.f32 %v3027_v58, %v1377_v21  ;;  %v1055_v48 = vadd.f32 %v1023_v38, %v957_v59 }
 0x161   : > { %v1607_v57 = vmul.f32 %v3058_v31, %v1573_v33  ;;  %v1608_v7 = vmul.f32 %v3058_v31, %v1574_v35  ;;  %v1020_v60 = vmul.f32 %v3428_v29, %v1573_v33  ;;  %v1021_v0 = vmul.f32 %v3428_v29, %v1574_v35 }
 0x162   : > { %v3432_v2 = vmin.f32 %v661_v20, 6.0  ;;  %v1444_v32 = vadd.f32 %v1412_v44, %v1344_v39  ;;  %v955_v30 = vadd.f32 %v923_v56, %v825_v37  ;;  %v1313_v54 = vmul.f32 %v3037_v6, %v1573_v33  ;;  %v624_v9 = vpop.f32.mrf.mxu2 }
 0x163   : > { %v1639_v12 = vadd.f32 %v1607_v57, %v1541_v18  ;;  %v1052_v31 = vadd.f32 %v1020_v60, %v954_v24  ;;  %v1150_v19 = vadd.f32 %v1118_v5, %v1051_v14  ;;  %v1314_v26 = vmul.f32 %v3037_v6, %v1574_v35  ;;  %v3464_v57 = vld [vmem:[#allocation2 + $0x110] sm:$0xff]  ;;  %v3933_v60 = vld [vmem:[#allocation20_spill] sm:$0xff] }
 0x164   : > { %769 = vst [vmem:[#allocation2 + $0x159] sm:$0xff] %v3432_v2  ;;  %v1542_v34 = vadd.f32 %v1510_v25, %v1444_v32  ;;  %v1053_v23 = vadd.f32 %v1021_v0, %v955_v30  ;;  %v1345_v4 = vadd.f32 %v1313_v54, %v1247_v28  ;;  %v625_v56 = vadd.f32 %v3409_v50, %v624_v9  ;;  %v3934_v5 = vld [vmem:[#allocation28_spill] sm:$0xff] }
 0x165   : > { %v1675_v55 = vadd.f32 %v3079_v52, %v1639_v12  ;;  %v1151_v58 = vadd.f32 %v3248_v61, %v1052_v31  ;;  %v1248_v39 = vadd.f32 %v1216_v63, %v1150_v19  ;;  %v1153_v18 = vadd.f32 %v1121_v42, %v1054_v49  ;;  %v3935_v31 = vld [vmem:[#allocation25_spill] sm:$0xff] }
 0x166   : > { %v1640_v16 = vadd.f32 %v1608_v7, %v1542_v34  ;;  %v1152_v40 = vadd.f32 %v3254_v43, %v1053_v23  ;;  %v1445_v14 = vadd.f32 %v3282_v11, %v1345_v4  ;;  %v662_v38 = vmax.f32 %v625_v56, 0.0  ;;  %v3451_v11 = vld [vmem:[#allocation2 + $0x108] sm:$0xff] }
 0x167   : > { %v1707_v24 = vmax.f32 %v1675_v55, 0.0  ;;  %v1249_v6 = vadd.f32 %v3263_v8, %v1151_v58  ;;  %v1346_v25 = vadd.f32 %v1314_v26, %v1248_v39  ;;  %v1154_v51 = vadd.f32 %v1122_v53, %v1055_v48  ;;  %v3932_v7 = vld [vmem:[#allocation22_spill] sm:$0xff]  ;;  %v3481_v58 = vld [vmem:[#allocation8 + $0x9] ss:$0 sm:$0xff]  ;;  %v3937_v39 = vld [vmem:[#allocation16_spill] sm:$0xff] }
 0x168   : > { %v1676_v28 = vadd.f32 %v3079_v52, %v1640_v16  ;;  %v1250_v61 = vadd.f32 %v3269_v45, %v1152_v40  ;;  %v1543_v63 = vadd.f32 %v3356_v41, %v1445_v14  ;;  %v3449_v33 = vmin.f32 %v662_v38, 6.0  ;;  %v3458_v41 = vld [vmem:[#allocation8 + $0x6] ss:$0 sm:$0xff]  ;;  %v3477_v34 = vld [vmem:[#allocation2 + $0x10a] sm:$0xff] }
 0x169   : > { %v1739_v59 = vmin.f32 %v1707_v24, 6.0  ;;  %v1347_v42 = vadd.f32 %v3273_v3, %v1249_v6  ;;  %v1446_v21 = vadd.f32 %v3286_v62, %v1346_v25  ;;  %v1251_v43 = vadd.f32 %v1219_v36, %v1153_v18  ;;  %v3930_v3 = vld [vmem:[#allocation23_spill] sm:$0xff]  ;;  %v3931_v36 = vld [vmem:[#allocation24_spill] sm:$0xff]  ;;  %v3936_v55 = vld [vmem:[#allocation26_spill] sm:$0xff] }
 0x16a   : > { %v1708_v8 = vmax.f32 %v1676_v28, 0.0  ;;  %v1348_v35 = vadd.f32 %v3278_v10, %v1250_v61  ;;  %v1641_v53 = vadd.f32 %v3364_v1, %v1543_v63  ;;  %v1252_v20 = vadd.f32 %v1220_v15, %v1154_v51  ;;  %770 = vst [vmem:[#allocation2 + $0x169] sm:$0xff] %v3449_v33  ;;  %v626_v37 = vpop.f32.mrf.mxu2  ;;  %v3485_v18 = vld [vmem:[#allocation2 + $0x112] sm:$0xff]  ;;  %v3939_v14 = vld [vmem:[#allocation17_spill] sm:$0xff]  ;;  %v3493_v25 = vld [vmem:[%s3884_s4] ss:$0 sm:$0xff] }
 0x16b   : > { %v1447_v49 = vadd.f32 %v3325_v13, %v1347_v42  ;;  %v1544_v45 = vadd.f32 %v3360_v47, %v1446_v21  ;;  %v1317_v62 = vmul.f32 %v3458_v41, %v3930_v3  ;;  %v1318_v44 = vmul.f32 %v3458_v41, %v3931_v36  ;;  %v3468_v13 = vld [vmem:[#allocation8 + $0x8] ss:$0 sm:$0xff]  ;;  %v3496_v28 = vld [vmem:[#allocation8 + $0xa] ss:$0 sm:$0xff] }
 0x16c   : > { %v1740_v10 = vmin.f32 %v1708_v8, 6.0  ;;  %v1448_v1 = vadd.f32 %v3932_v7, %v1348_v35  ;;  %v1677_v15 = vadd.f32 %v3079_v52, %v1641_v53  ;;  %v1417_v47 = vmul.f32 %v3468_v13, %v3451_v11  ;;  %v3938_v16 = vld [vmem:[#allocation27_spill] sm:$0xff] }
 0x16d   : > { %v1545_v0 = vadd.f32 %v3933_v60, %v1447_v49  ;;  %v1642_v32 = vadd.f32 %v3934_v5, %v1544_v45  ;;  %v1349_v12 = vadd.f32 %v1317_v62, %v1251_v43  ;;  %v1350_v30 = vadd.f32 %v1318_v44, %v1252_v20  ;;  %v892_v44 = vld [vmem:[#allocation2 + $0xf1] sm:$0xff] }
 0x16e   : > { %v1765_v54 = vpack.c.bf16 %v1740_v10, %v1739_v59  ;;  %v1546_v19 = vadd.f32 %v3935_v31, %v1448_v1  ;;  %v1709_v26 = vmax.f32 %v1677_v15, 0.0  ;;  %v1418_v48 = vmul.f32 %v3468_v13, %v3464_v57 }
 0x16f   : > { %v1643_v23 = vadd.f32 %v3936_v55, %v1545_v0  ;;  %v1678_v4 = vadd.f32 %v3079_v52, %v1642_v32  ;;  %v1449_v9 = vadd.f32 %v1417_v47, %v1349_v12  ;;  %v1515_v56 = vmul.f32 %v3481_v58, %v3937_v39  ;;  %v893_v47 = vld [vmem:[#allocation2 + $0xf9] sm:$0xff] }
 0x170   : > { %1881 = vmatmul.bf16.gmra.mxu1 %v1765_v54  ;;  %v1644_v24 = vadd.f32 %v3938_v16, %v1546_v19  ;;  %v1450_v40 = vadd.f32 %v1418_v48, %v1350_v30  ;;  %v1516_v6 = vmul.f32 %v3481_v58, %v3939_v14  ;;  %v1613_v59 = vmul.f32 %v3496_v28, %v3477_v34  ;;  %v3516_v54 = vld [vmem:[#allocation8 + $0x1] ss:$0 sm:$0xff]  ;;  %v3531_v16 = vld [vmem:[#allocation8 + $0x4] ss:$0 sm:$0xff] }
 0x171   : > { %v1679_v52 = vadd.f32 %v3493_v25, %v1643_v23  ;;  %v1710_v38 = vmax.f32 %v1678_v4, 0.0  ;;  %v1547_v51 = vadd.f32 %v1515_v56, %v1449_v9  ;;  %v1614_v42 = vmul.f32 %v3496_v28, %v3485_v18 }
 0x172   : > { %v1680_v61 = vadd.f32 %v3493_v25, %v1644_v24  ;;  %v1548_v63 = vadd.f32 %v1516_v6, %v1450_v40  ;;  %v627_v21 = vadd.f32 %v3409_v50, %v626_v37  ;;  %v3504_v8 = vmin.f32 %v1709_v26, 6.0  ;;  %v629_v62 = vpop.f32.mrf.mxu2  ;;  %v3537_v40 = vld [vmem:[#allocation2 + $0x120] sm:$0xff]  ;;  %v3539_v6 = vld [vmem:[#allocation2 + $0x128] sm:$0xff] }
 0x173   : > { %v1711_v43 = vmax.f32 %v1679_v52, 0.0  ;;  %v1742_v35 = vmin.f32 %v1710_v38, 6.0  ;;  %v1645_v53 = vadd.f32 %v1613_v59, %v1547_v51  ;;  %v630_v1 = vadd.f32 %v3409_v50, %v629_v62  ;;  %v3941_v62 = vld [vmem:[#allocation19_spill] sm:$0xff] }
 0x174   : > { %v1712_v20 = vmax.f32 %v1680_v61, 0.0  ;;  %v1646_v49 = vadd.f32 %v1614_v42, %v1548_v63  ;;  %v663_v45 = vmax.f32 %v627_v21, 0.0  ;;  %v828_v15 = vmul.f32 %v3425_v27, %v3315_v22  ;;  %v3552_v42 = vld [vmem:[#allocation2 + $0x122] sm:$0xff] }
 0x175   : > { %v1766_v10 = vpack.c.bf16 %v1742_v35, %v3504_v8  ;;  %v1681_v7 = vadd.f32 %v3493_v25, %v1645_v53  ;;  %v1743_v37 = vmin.f32 %v1711_v43, 6.0  ;;  %v664_v12 = vmax.f32 %v630_v1, 0.0  ;;  %v894_v53 = vld [vmem:[#allocation2 + $0x109] sm:$0xff] }
 0x176   : > { %v1744_v60 = vmin.f32 %v1712_v20, 6.0  ;;  %v1682_v0 = vadd.f32 %v3493_v25, %v1646_v49  ;;  %v3512_v5 = vmin.f32 %v663_v45, 6.0  ;;  %v829_v30 = vmul.f32 %v3425_v27, %v3321_v17  ;;  %v895_v20 = vld [vmem:[#allocation2 + $0x111] sm:$0xff] }
 0x177   : > { %v1713_v32 = vmax.f32 %v1681_v7, 0.0  ;;  %v926_v31 = vmul.f32 %v3516_v54, %v892_v44  ;;  %v927_v22 = vmul.f32 %v3516_v54, %v893_v47  ;;  %v1024_v48 = vmul.f32 %v3428_v29, %v3930_v3 }
 0x178   : > { %v1767_v19 = vpack.c.bf16 %v1744_v60, %v1743_v37  ;;  %v1714_v26 = vmax.f32 %v1682_v0, 0.0  ;;  %771 = vst [vmem:[#allocation2 + $0x171] sm:$0xff] %v3512_v5  ;;  %v3525_v23 = vmin.f32 %v664_v12, 6.0  ;;  %v1025_v17 = vmul.f32 %v3428_v29, %v3931_v36  ;;  %v3542_v36 = vld [vmem:[#allocation8 + $0x5] ss:$0 sm:$0xff]  ;;  %v1582_v0 = vld [vmem:[#allocation2 + $0x12a] sm:$0xff] }
 0x179   : > { %v3523_v55 = vmin.f32 %v1713_v32, 6.0  ;;  %v958_v4 = vadd.f32 %v926_v31, %v828_v15  ;;  %v959_v56 = vadd.f32 %v927_v22, %v829_v30  ;;  %v1123_v24 = vmul.f32 %v3531_v16, %v3451_v11 }
 0x17a   : > { %1891 = vmatmul.bf16.vlgmr.msra.gmra.mxu3 %v1767_v19  ;;  %v3529_v9 = vmin.f32 %v1714_v26, 6.0  ;;  %v1124_v3 = vmul.f32 %v3531_v16, %v3464_v57  ;;  %772 = vst [vmem:[#allocation2 + $0x181] sm:$0xff] %v3525_v23  ;;  %v1221_v38 = vmul.f32 %v3542_v36, %v3937_v39  ;;  %v1222_v61 = vmul.f32 %v3542_v36, %v3939_v14  ;;  %v631_v21 = vpop.f32.mrf.mxu2  ;;  %v3940_v14 = vld [vmem:[#allocation18_spill] sm:$0xff] }
 0x17b   : > { %v1056_v52 = vadd.f32 %v1024_v48, %v958_v4  ;;  %v1057_v59 = vadd.f32 %v1025_v17, %v959_v56  ;;  %v1319_v63 = vmul.f32 %v3458_v41, %v3477_v34  ;;  %v1320_v8 = vmul.f32 %v3458_v41, %v3485_v18  ;;  %v3587_v56 = vld [vmem:[%s2930_s23] sm:$0xff]  }
 0x17c   : > { %v1768_v51 = vpack.c.bf16 %v3529_v9, %v3523_v55  ;;  %v1419_v39 = vmul.f32 %v3468_v13, %v3537_v40  ;;  %v1420_v35 = vmul.f32 %v3468_v13, %v3539_v6  ;;  %v1517_v45 = vmul.f32 %v3481_v58, %v3940_v14 }
 0x17d   : > { %v1155_v43 = vadd.f32 %v1123_v24, %v1056_v52  ;;  %v1156_v49 = vadd.f32 %v1124_v3, %v1057_v59  ;;  %v1518_v44 = vmul.f32 %v3481_v58, %v3941_v62  ;;  %v632_v7 = vadd.f32 %v3409_v50, %v631_v21  ;;  %v3594_v59 = vld [vmem:[#allocation2 + $0x140] sm:$0xff] }
 0x17e   : > { %v1615_v15 = vmul.f32 %v3496_v28, %v3552_v42  ;;  %v830_v47 = vmul.f32 %v3425_v27, %v3451_v11  ;;  %v831_v37 = vmul.f32 %v3425_v27, %v3464_v57  ;;  %v928_v12 = vmul.f32 %v3516_v54, %v894_v53 }
 0x17f   : > { %v1253_v1 = vadd.f32 %v1221_v38, %v1155_v43  ;;  %v1254_v60 = vadd.f32 %v1222_v61, %v1156_v49  ;;  %v665_v32 = vmax.f32 %v632_v7, 0.0  ;;  %v929_v30 = vmul.f32 %v3516_v54, %v895_v20  ;;  %v3592_v38 = vld [vmem:[#allocation2 + $0x138] sm:$0xff] }
 0x180   : > { %1886 = vmatmul.bf16.gmra.mxu1 %v1766_v10  ;;  %v1026_v31 = vmul.f32 %v3428_v29, %v3477_v34  ;;  %v1027_v19 = vmul.f32 %v3428_v29, %v3485_v18  ;;  %v1125_v11 = vmul.f32 %v3531_v16, %v3537_v40  ;;  %v960_v26 = vadd.f32 %v928_v12, %v830_v47  ;;  %v3942_v47 = vld [vmem:[#allocation21_spill] sm:$0xff]  ;;  %v3618_v12 = vld [vmem:[%s3886_s6] ss:$0 sm:$0xff] }
 0x181   : > { %v1351_v50 = vadd.f32 %v1319_v63, %v1253_v1  ;;  %v1352_v57 = vadd.f32 %v1320_v8, %v1254_v60  ;;  %v3579_v10 = vmin.f32 %v665_v32, 6.0  ;;  %v961_v22 = vadd.f32 %v929_v30, %v831_v37 }
 0x182   : > { %v1616_v4 = vmul.f32 %v3496_v28, %v1582_v0  ;;  %v1126_v17 = vmul.f32 %v3531_v16, %v3539_v6  ;;  %v1223_v34 = vmul.f32 %v3542_v36, %v3940_v14  ;;  %v1058_v24 = vadd.f32 %v1026_v31, %v960_v26 }
 0x183   : > { %v1451_v48 = vadd.f32 %v1419_v39, %v1351_v50  ;;  %v1452_v18 = vadd.f32 %v1420_v35, %v1352_v57  ;;  %773 = vst [vmem:[#allocation2 + $0x189] sm:$0xff] %v3579_v10  ;;  %v1059_v3 = vadd.f32 %v1027_v19, %v961_v22  ;;  %v1224_v52 = vmul.f32 %v3542_v36, %v3941_v62  ;;  %v896_v35 = vld [vmem:[#allocation2 + $0x121] sm:$0xff] }
 0x184   : > { %v1321_v63 = vmul.f32 %v3458_v41, %v3552_v42  ;;  %v1157_v43 = vadd.f32 %v1125_v11, %v1058_v24  ;;  %v1322_v39 = vmul.f32 %v3458_v41, %v1582_v0  ;;  %v2362_v53 = vunpack.c.l.bf16 %v3587_v56  ;;  %v3943_v19 = vld [vmem:[#allocation29_spill] sm:$0xff]  ;;  %v1583_v11 = vld [vmem:[#allocation2 + $0x13a] sm:$0xff] }
 0x185   : > { %v1549_v61 = vadd.f32 %v1517_v45, %v1451_v48  ;;  %v1550_v21 = vadd.f32 %v1518_v44, %v1452_v18  ;;  %v1158_v8 = vadd.f32 %v1126_v17, %v1059_v3  ;;  %v1421_v49 = vmul.f32 %v3468_v13, %v3592_v38  ;;  %v1584_v17 = vld [vmem:[#allocation2 + $0x142] sm:$0xff] }
 0x186   : > { %v1422_v14 = vmul.f32 %v3468_v13, %v3594_v59  ;;  %v1255_v45 = vadd.f32 %v1223_v34, %v1157_v43  ;;  %v1519_v44 = vmul.f32 %v3481_v58, %v3942_v47  ;;  %v832_v60 = vmul.f32 %v3425_v27, %v3537_v40 }
 0x187   : > { %v1647_v20 = vadd.f32 %v1615_v15, %v1549_v61  ;;  %v1648_v7 = vadd.f32 %v1616_v4, %v1550_v21  ;;  %v1256_v1 = vadd.f32 %v1224_v52, %v1158_v8  ;;  %v833_v15 = vmul.f32 %v3425_v27, %v3539_v6  ;;  %v3637_v21 = vld [vmem:[#allocation2 + $0x150] sm:$0xff] }
 0x188   : > { %v930_v32 = vmul.f32 %v3516_v54, %v896_v35  ;;  %v1353_v50 = vadd.f32 %v1321_v63, %v1255_v45  ;;  %v931_v40 = vmul.f32 %v3516_v54, %v3941_v62  ;;  %v1520_v6 = vmul.f32 %v3481_v58, %v3943_v19 }
 0x189   : > { %v1683_v37 = vadd.f32 %v3493_v25, %v1647_v20  ;;  %v1684_v30 = vadd.f32 %v3493_v25, %v1648_v7  ;;  %v1354_v31 = vadd.f32 %v1322_v39, %v1256_v1  ;;  %v1028_v55 = vmul.f32 %v3428_v29, %v3552_v42  ;;  %v3640_v20 = vld [vmem:[#allocation2 + $0x158] sm:$0xff] }
 0x18a   : > { %1896 = vmatmul.bf16.gmra.mxu3 %v1768_v51  ;;  %v962_v57 = vadd.f32 %v930_v32, %v832_v60  ;;  %v1029_v9 = vmul.f32 %v3428_v29, %v1582_v0  ;;  %v1453_v26 = vadd.f32 %v1421_v49, %v1353_v50  ;;  %v963_v48 = vadd.f32 %v931_v40, %v833_v15  ;;  %v898_v50 = vld [vmem:[#allocation2 + $0x139] sm:$0xff] }
 0x18b   : > { %v1715_v51 = vmax.f32 %v1683_v37, 0.0  ;;  %v1454_v22 = vadd.f32 %v1422_v14, %v1354_v31  ;;  %v1127_v62 = vmul.f32 %v3531_v16, %v3592_v38  ;;  %v1128_v18 = vmul.f32 %v3531_v16, %v3594_v59 }
 0x18c   : > { %v1060_v34 = vadd.f32 %v1028_v55, %v962_v57  ;;  %v1716_v3 = vmax.f32 %v1684_v30, 0.0  ;;  %v1551_v42 = vadd.f32 %v1519_v44, %v1453_v26  ;;  %v1617_v0 = vmul.f32 %v3496_v28, %v1583_v11 }
 0x18d   : > { %v1852_v4 = vpop.f32.mrf.mxu1  ;;  %v1061_v52 = vadd.f32 %v1029_v9, %v963_v48  ;;  %v1225_v63 = vmul.f32 %v3542_v36, %v3942_v47  ;;  %v1747_v8 = vmin.f32 %v1715_v51, 6.0  ;;  %v1552_v39 = vadd.f32 %v1520_v6, %v1454_v22  ;;  %v1585_v22 = vld [vmem:[#allocation2 + $0x152] sm:$0xff] }
 0x18e   : > { %v1853_v24 = vadd.f32 %v3618_v12, %v1852_v4  ;;  %v1159_v61 = vadd.f32 %v1127_v62, %v1060_v34  ;;  %v1618_v35 = vmul.f32 %v3496_v28, %v1584_v17  ;;  %v1226_v14 = vmul.f32 %v3542_v36, %v3943_v19 }
 0x18f   : > { %v1160_v49 = vadd.f32 %v1128_v18, %v1061_v52  ;;  %v1323_v45 = vmul.f32 %v3458_v41, %v1583_v11  ;;  %v1748_v1 = vmin.f32 %v1716_v3, 6.0  ;;  %v1649_v47 = vadd.f32 %v1617_v0, %v1551_v42  ;;  %v3670_v42 = vld [vmem:[%s2930_s23 + $0x8] sm:$0xff]  }
 0x190   : > { %v1996_v43 = vadd.f32 %v2362_v53, %v1853_v24  ;;  %v1257_v7 = vadd.f32 %v1225_v63, %v1159_v61  ;;  %v1324_v53 = vmul.f32 %v3458_v41, %v1584_v17  ;;  %v1423_v44 = vmul.f32 %v3468_v13, %v3637_v21 }
 0x191   : > { %v1258_v37 = vadd.f32 %v1226_v14, %v1160_v49  ;;  %v1424_v15 = vmul.f32 %v3468_v13, %v3640_v20  ;;  %v2363_v32 = vunpack.c.h.bf16 %v3587_v56  ;;  %v1650_v30 = vadd.f32 %v1618_v35, %v1552_v39 }
 0x192   : > { %2028 = vst [vmem:[%s3645_s20] sm:$0xff] %v1996_v43  ;;  %v1355_v60 = vadd.f32 %v1323_v45, %v1257_v7  ;;  %v1521_v57 = vmul.f32 %v3481_v58, %v3391_v46  ;;  %v834_v55 = vmul.f32 %v3425_v27, %v3592_v38  ;;  %v1769_v51 = vpack.c.bf16 %v1748_v1, %v1747_v8  ;;  %v1586_v38 = vld [vmem:[#allocation2 + $0x15a] sm:$0xff] }
 0x193   : > { %v1356_v40 = vadd.f32 %v1324_v53, %v1258_v37  ;;  %v1685_v26 = vadd.f32 %v3493_v25, %v1649_v47  ;;  %v1522_v48 = vmul.f32 %v3481_v58, %v3432_v2  ;;  %v835_v4 = vmul.f32 %v3425_v27, %v3594_v59  ;;  %v3683_v47 = vld [vmem:[#allocation2 + $0x170] sm:$0xff] }
 0x194   : > { %v1455_v6 = vadd.f32 %v1423_v44, %v1355_v60  ;;  %v932_v34 = vmul.f32 %v3516_v54, %v898_v50  ;;  %v1686_v18 = vadd.f32 %v3493_v25, %v1650_v30  ;;  %v933_v24 = vmul.f32 %v3516_v54, %v3943_v19 }
 0x195   : > { %v1854_v31 = vpop.f32.mrf.mxu1  ;;  %v1456_v56 = vadd.f32 %v1424_v15, %v1356_v40  ;;  %v1030_v3 = vmul.f32 %v3428_v29, %v1583_v11  ;;  %v1619_v52 = vmul.f32 %v3496_v28, %v1585_v22  ;;  %v1031_v63 = vmul.f32 %v3428_v29, %v1584_v17 }
 0x196   : > { %v1855_v9 = vadd.f32 %v3618_v12, %v1854_v31  ;;  %v1553_v0 = vadd.f32 %v1521_v57, %v1455_v6  ;;  %v964_v61 = vadd.f32 %v932_v34, %v834_v55  ;;  %v1717_v59 = vmax.f32 %v1685_v26, 0.0 }
 0x197   : > { %v965_v43 = vadd.f32 %v933_v24, %v835_v4  ;;  %v1130_v8 = vmul.f32 %v3531_v16, %v3640_v20  ;;  %v1554_v39 = vadd.f32 %v1522_v48, %v1456_v56  ;;  %v1620_v19 = vmul.f32 %v3496_v28, %v1586_v38  ;;  %v3700_v56 = vld [vmem:[%s2930_s23 + $0x10] sm:$0xff]   ;;  %v1390_v4 = vld [vmem:[#allocation2 + $0x168] sm:$0xff] }
 0x198   : > { %v1997_v62 = vadd.f32 %v2363_v32, %v1855_v9  ;;  %v1062_v35 = vadd.f32 %v1030_v3, %v964_v61  ;;  %v1129_v11 = vmul.f32 %v3531_v16, %v3637_v21  ;;  %v2366_v49 = vunpack.c.l.bf16 %v3670_v42 }
 0x199   : > { %v1718_v14 = vmax.f32 %v1686_v18, 0.0  ;;  %v1063_v7 = vadd.f32 %v1031_v63, %v965_v43  ;;  %v1228_v17 = vmul.f32 %v3542_v36, %v3432_v2  ;;  %v1651_v1 = vadd.f32 %v1619_v52, %v1553_v0 }
 0x19a   : > { %2029 = vst [vmem:[%s3645_s20 + $0x8] sm:$0xff] %v1997_v62  ;;  %1901 = vmatmul.bf16.gmra.mxu3 %v1769_v51  ;;  %v2367_v44 = vunpack.c.h.bf16 %v3670_v42  ;;  %v1326_v60 = vmul.f32 %v3458_v41, %v1586_v38  ;;  %v1749_v15 = vmin.f32 %v1717_v59, 6.0  ;;  %v1652_v32 = vadd.f32 %v1620_v19, %v1554_v39 }
 0x19b   : > { %v1162_v37 = vadd.f32 %v1130_v8, %v1063_v7  ;;  %v1161_v30 = vadd.f32 %v1129_v11, %v1062_v35  ;;  %v1227_v50 = vmul.f32 %v3542_v36, %v3391_v46  ;;  %v1750_v40 = vmin.f32 %v1718_v14, 6.0  ;;  %v1587_v11 = vld [vmem:[#allocation2 + $0x16a] sm:$0xff]  ;;  %v1392_v7 = vld [vmem:[#allocation2 + $0x180] sm:$0xff] }
 0x19c   : > { %v1426_v57 = vmul.f32 %v3468_v13, %v3683_v47  ;;  %v1687_v55 = vadd.f32 %v3493_v25, %v1651_v1  ;;  %v1325_v9 = vmul.f32 %v3458_v41, %v1585_v22  ;;  %v1524_v51 = vmul.f32 %v3481_v58, %v3512_v5  ;;  %v1588_v1 = vld [vmem:[#allocation2 + $0x172] sm:$0xff] }
 0x19d   : > { %v1857_v45 = vpop.f32.mrf.mxu1  ;;  %v1260_v6 = vadd.f32 %v1228_v17, %v1162_v37  ;;  %v836_v26 = vmul.f32 %v3425_v27, %v3637_v21  ;;  %v837_v34 = vmul.f32 %v3425_v27, %v3640_v20  ;;  %v934_v62 = vmul.f32 %v3516_v54, %v3391_v46 }
 0x19e   : > { %v1858_v53 = vadd.f32 %v3618_v12, %v1857_v45  ;;  %v935_v18 = vmul.f32 %v3516_v54, %v3432_v2  ;;  %v1688_v24 = vadd.f32 %v3493_v25, %v1652_v32  ;;  %v1259_v3 = vadd.f32 %v1227_v50, %v1161_v30 }
 0x19f   : > { %v1358_v48 = vadd.f32 %v1326_v60, %v1260_v6  ;;  %v1032_v42 = vmul.f32 %v3428_v29, %v1585_v22  ;;  %v1033_v21 = vmul.f32 %v3428_v29, %v1586_v38  ;;  %v966_v52 = vadd.f32 %v934_v62, %v836_v26  ;;  %v1393_v60 = vld [vmem:[#allocation2 + $0x188] sm:$0xff] }
 0x1a0   : > { %v1998_v31 = vadd.f32 %v2366_v49, %v1858_v53  ;;  %v967_v61 = vadd.f32 %v935_v18, %v837_v34  ;;  %v1131_v63 = vmul.f32 %v3531_v16, %v1390_v4  ;;  %v2370_v20 = vunpack.c.l.bf16 %v3700_v56  ;;  %v1589_v26 = vld [vmem:[#allocation2 + $0x182] sm:$0xff]  ;;  %v1590_v62 = vld [vmem:[#allocation2 + $0x18a] sm:$0xff] }
 0x1a1   : > { %v1458_v0 = vadd.f32 %v1426_v57, %v1358_v48  ;;  %v1719_v43 = vmax.f32 %v1687_v55, 0.0  ;;  %v1425_v46 = vmul.f32 %v3468_v13, %v1390_v4  ;;  %v1132_v2 = vmul.f32 %v3531_v16, %v3683_v47 }
 0x1a2   : > { %2030 = vst [vmem:[%s3645_s20 + $0x10] sm:$0xff] %v1998_v31  ;;  %v1064_v22 = vadd.f32 %v1032_v42, %v966_v52  ;;  %v1229_v38 = vmul.f32 %v3542_v36, %v3449_v33  ;;  %v1720_v19 = vmax.f32 %v1688_v24, 0.0  ;;  %v1357_v35 = vadd.f32 %v1325_v9, %v1259_v3 }
 0x1a3   : > { %v3717_v39 = vadd.f32 %v1524_v51, %v1458_v0  ;;  %v1065_v49 = vadd.f32 %v1033_v21, %v967_v61  ;;  %v1230_v14 = vmul.f32 %v3542_v36, %v3512_v5  ;;  %v1770_v45 = vpack.c.bf16 %v1750_v40, %v1749_v15 }
 0x1a4   : > { %v1163_v53 = vadd.f32 %v1131_v63, %v1064_v22  ;;  %v1327_v37 = vmul.f32 %v3458_v41, %v1587_v11  ;;  %v2371_v32 = vunpack.c.h.bf16 %v3700_v56  ;;  %v1523_v30 = vmul.f32 %v3481_v58, %v3449_v33 }
 0x1a5   : > { %v1859_v59 = vpop.f32.mrf.mxu1  ;;  %v1164_v50 = vadd.f32 %v1132_v2, %v1065_v49  ;;  %v1328_v31 = vmul.f32 %v3458_v41, %v1588_v1  ;;  %v3729_v6 = vmin.f32 %v1719_v43, 6.0  ;;  %v1427_v40 = vmul.f32 %v3468_v13, %v1392_v7 }
 0x1a6   : > { %v1860_v8 = vadd.f32 %v3618_v12, %v1859_v59  ;;  %v1261_v15 = vadd.f32 %v1229_v38, %v1163_v53  ;;  %v3733_v57 = vmin.f32 %v1720_v19, 6.0  ;;  %v1457_v55 = vadd.f32 %v1425_v46, %v1357_v35 }
 0x1a7   : > { %v1262_v9 = vadd.f32 %v1230_v14, %v1164_v50  ;;  %v1428_v51 = vmul.f32 %v3468_v13, %v1393_v60  ;;  %v1525_v34 = vmul.f32 %v3481_v58, %v3525_v23  ;;  %v838_v18 = vmul.f32 %v3425_v27, %v1390_v4 }
 0x1a8   : > { %v1999_v17 = vadd.f32 %v2367_v44, %v1860_v8  ;;  %v1621_v44 = vmul.f32 %v3496_v28, %v1587_v11  ;;  %v1359_v48 = vadd.f32 %v1327_v37, %v1261_v15  ;;  %v839_v24 = vmul.f32 %v3425_v27, %v3683_v47 }
 0x1a9   : > { %v1360_v42 = vadd.f32 %v1328_v31, %v1262_v9  ;;  %v1526_v21 = vmul.f32 %v3481_v58, %v3579_v10  ;;  %v936_v0 = vmul.f32 %v3516_v54, %v3449_v33  ;;  %v937_v52 = vmul.f32 %v3516_v54, %v3512_v5  ;;  %v1494_v31 = vld [vmem:[#allocation2 + $0x1a1] sm:$0xff] }
 0x1aa   : > { %2031 = vst [vmem:[%s3645_s20 + $0x18] sm:$0xff] %v1999_v17  ;;  %1906 = vmatmul.bf16.gmra.mxu3 %v1770_v45  ;;  %v1459_v63 = vadd.f32 %v1427_v40, %v1359_v48  ;;  %v1623_v4 = vmul.f32 %v3496_v28, %v1589_v26  ;;  %v1034_v59 = vmul.f32 %v3428_v29, %v1587_v11  ;;  %v1591_v9 = vld [vmem:[#allocation2 + $0x19a] sm:$0xff]  ;;  %v1592_v48 = vld [vmem:[#allocation2 + $0x1a2] sm:$0xff] }
 0x1ab   : > { %v1460_v27 = vadd.f32 %v1428_v51, %v1360_v42  ;;  %v1624_v47 = vmul.f32 %v3496_v28, %v1590_v62  ;;  %v968_v43 = vadd.f32 %v936_v0, %v838_v18  ;;  %v969_v46 = vadd.f32 %v937_v52, %v839_v24 }
 0x1ac   : > { %v1555_v8 = vadd.f32 %v1523_v30, %v1457_v55  ;;  %v1557_v22 = vadd.f32 %v1525_v34, %v1459_v63  ;;  %v1035_v33 = vmul.f32 %v3428_v29, %v1588_v1  ;;  %v1133_v54 = vmul.f32 %v3531_v16, %v1392_v7  ;;  %v1493_v30 = vld [vmem:[#allocation2 + $0x199] sm:$0xff] }
 0x1ad   : > { %v1862_v3 = vpop.f32.mrf.mxu1  ;;  %v1558_v38 = vadd.f32 %v1526_v21, %v1460_v27  ;;  %v1066_v5 = vadd.f32 %v1034_v59, %v968_v43  ;;  %v1134_v19 = vmul.f32 %v3531_v16, %v1393_v60  ;;  %v1231_v11 = vmul.f32 %v3542_v36, %v3525_v23 }
 0x1ae   : > { %v1863_v61 = vadd.f32 %v3618_v12, %v1862_v3  ;;  %v1655_v35 = vadd.f32 %v1623_v4, %v1557_v22  ;;  %v1067_v49 = vadd.f32 %v1035_v33, %v969_v46  ;;  %v1232_v14 = vmul.f32 %v3542_v36, %v3579_v10  ;;  %v2426_v3 = vld [vmem:[%s2930_s23 + $0x18] sm:$0xff]  }
 0x1af   : > { %v1622_v17 = vmul.f32 %v3496_v28, %v1588_v1  ;;  %v1656_v45 = vadd.f32 %v1624_v47, %v1558_v38  ;;  %v1165_v29 = vadd.f32 %v1133_v54, %v1066_v5  ;;  %v1329_v53 = vmul.f32 %v3458_v41, %v1589_v26 }
 0x1b0   : > { %v2000_v2 = vadd.f32 %v2370_v20, %v1863_v61  ;;  %v1394_v20 = vld [vmem:[#allocation2 + $0x198] sm:$0xff]  ;;  %v1771_v7 = vpack.c.bf16 %v3733_v57, %v3729_v6  ;;  %v1691_v16 = vadd.f32 %v3493_v25, %v1655_v35  ;;  %v1166_v37 = vadd.f32 %v1134_v19, %v1067_v49  ;;  %v2560_v6 = vld [vmem:[#allocation2 + $0x8] sm:$0xff] }
 0x1b1   : > { %v1330_v60 = vmul.f32 %v3458_v41, %v1590_v62  ;;  %v1653_v50 = vadd.f32 %v1621_v44, %v1555_v8  ;;  %v1692_v36 = vadd.f32 %v3493_v25, %v1656_v45  ;;  %v1263_v10 = vadd.f32 %v1231_v11, %v1165_v29  ;;  %v2427_v45 = vld [vmem:[%s2930_s23 + $0x20] sm:$0xff]  }
 0x1b2   : > { %2032 = vst [vmem:[%s3645_s20 + $0x20] sm:$0xff] %v2000_v2  ;;  %v1429_v1 = vmul.f32 %v3468_v13, %v1394_v20  ;;  %v1723_v40 = vmax.f32 %v1691_v16, 0.0  ;;  %v1264_v55 = vadd.f32 %v1232_v14, %v1166_v37  ;;  %v1430_v57 = vmul.f32 %v2560_v6, %v3468_v13  ;;  %v2429_v6 = vld [vmem:[%s2930_s23 + $0x30] sm:$0xff]  }
 0x1b3   : > { %v1654_v41 = vadd.f32 %v1622_v17, %v3717_v39  ;;  %v1724_v51 = vmax.f32 %v1692_v36, 0.0  ;;  %v1361_v44 = vadd.f32 %v1329_v53, %v1263_v10  ;;  %v1527_v26 = vmul.f32 %v3481_v58, %v1493_v30 }
 0x1b4   : > { %v1755_v62 = vmin.f32 %v1723_v40, 6.0  ;;  %v1362_v18 = vadd.f32 %v1330_v60, %v1264_v55  ;;  %v1528_v24 = vmul.f32 %v3481_v58, %v1494_v31  ;;  %v1625_v13 = vmul.f32 %v3496_v28, %v1591_v9 }
 0x1b5   : > { %v1864_v23 = vpop.f32.mrf.mxu1  ;;  %v1756_v42 = vmin.f32 %v1724_v51, 6.0  ;;  %v1461_v21 = vadd.f32 %v1429_v1, %v1361_v44  ;;  %v1626_v0 = vmul.f32 %v3496_v28, %v1592_v48  ;;  %v2374_v63 = vunpack.c.l.bf16 %v2426_v3 }
 0x1b6   : > { %v1865_v15 = vadd.f32 %v3618_v12, %v1864_v23  ;;  %v1462_v39 = vadd.f32 %v1430_v57, %v1362_v18  ;;  %v1689_v56 = vadd.f32 %v3493_v25, %v1653_v50  ;;  %v2375_v5 = vunpack.c.h.bf16 %v2426_v3  ;;  %v2428_v23 = vld [vmem:[%s2930_s23 + $0x28] sm:$0xff]   ;;  %v2431_v18 = vld [vmem:[%s2930_s23 + $0x40] sm:$0xff]  }
 0x1b7   : > { %v1773_v52 = vpack.c.bf16 %v1756_v42, %v1755_v62  ;;  %v1559_v61 = vadd.f32 %v1527_v26, %v1461_v21  ;;  %v2379_v16 = vunpack.c.h.bf16 %v2427_v45  ;;  %v2382_v50 = vunpack.c.l.bf16 %v2428_v23  ;;  %v2430_v62 = vld [vmem:[%s2930_s23 + $0x38] sm:$0xff]  }
 0x1b8   : > { %v2001_v34 = vadd.f32 %v2371_v32, %v1865_v15  ;;  %v1690_v32 = vadd.f32 %v3493_v25, %v1654_v41  ;;  %v1560_v4 = vadd.f32 %v1528_v24, %v1462_v39  ;;  %v1721_v2 = vmax.f32 %v1689_v56, 0.0 }
 0x1b9   : > { %v1657_v59 = vadd.f32 %v1625_v13, %v1559_v61  ;;  %v2383_v31 = vunpack.c.h.bf16 %v2428_v23  ;;  %v2386_v57 = vunpack.c.l.bf16 %v2429_v6  ;;  %v2387_v44 = vunpack.c.h.bf16 %v2429_v6  ;;  %v2435_v23 = vld [vmem:[%s2930_s23 + $0x60] sm:$0xff]   ;;  %v2436_v6 = vld [vmem:[%s2930_s23 + $0x68] sm:$0xff]  }
 0x1ba   : > { %2033 = vst [vmem:[%s3645_s20 + $0x28] sm:$0xff] %v2001_v34  ;;  %1911 = vmatmul.bf16.gmra.mxu3 %v1771_v7  ;;  %v1658_v47 = vadd.f32 %v1626_v0, %v1560_v4  ;;  %v1722_v28 = vmax.f32 %v1690_v32, 0.0  ;;  %v1753_v54 = vmin.f32 %v1721_v2, 6.0  ;;  %v2390_v24 = vunpack.c.l.bf16 %v2430_v62 }
 0x1bb   : > { %v1693_v43 = vadd.f32 %v3493_v25, %v1657_v59  ;;  %v2394_v3 = vunpack.c.l.bf16 %v2431_v18  ;;  %v2391_v61 = vunpack.c.h.bf16 %v2430_v62  ;;  %v2437_v62 = vld [vmem:[%s2930_s23 + $0x70] sm:$0xff]  }
 0x1bc   : > { %v1694_v8 = vadd.f32 %v3493_v25, %v1658_v47  ;;  %v1754_v19 = vmin.f32 %v1722_v28, 6.0  ;;  %v2378_v25 = vunpack.c.l.bf16 %v2427_v45  ;;  %v2432_v47 = vld [vmem:[%s2930_s23 + $0x48] sm:$0xff]   ;;  %v2434_v45 = vld [vmem:[%s2930_s23 + $0x58] sm:$0xff]  }
 0x1bd   : > { %v1867_v58 = vpop.f32.mrf.mxu1  ;;  %v1725_v22 = vmax.f32 %v1693_v43, 0.0  ;;  %v2398_v43 = vunpack.c.l.bf16 %v2432_v47 }
 0x1be   : > { %v1868_v27 = vadd.f32 %v3618_v12, %v1867_v58  ;;  %v1726_v33 = vmax.f32 %v1694_v8, 0.0  ;;  %v1772_v17 = vpack.c.bf16 %v1754_v19, %v1753_v54  ;;  %v2399_v8 = vunpack.c.h.bf16 %v2432_v47 }
 0x1bf   : > { %v1757_v38 = vmin.f32 %v1725_v22, 6.0 }
 0x1c0   : > { %v2002_v46 = vadd.f32 %v2374_v63, %v1868_v27  ;;  %v1758_v35 = vmin.f32 %v1726_v33, 6.0  ;;  %v2395_v63 = vunpack.c.h.bf16 %v2431_v18  ;;  %v2418_v18 = vunpack.c.l.bf16 %v2437_v62 }
 0x1c2   : > { %2034 = vst [vmem:[%s3645_s20 + $0x30] sm:$0xff] %v2002_v46  ;;  %v1774_v14 = vpack.c.bf16 %v1758_v35, %v1757_v38 }
 0x1c5   : > { %v1869_v49 = vpop.f32.mrf.mxu1 }
 0x1c6   : > { %v1870_v11 = vadd.f32 %v3618_v12, %v1869_v49 }
 0x1c8   : > { %v2003_v20 = vadd.f32 %v2375_v5, %v1870_v11  ;;  %v2433_v5 = vld [vmem:[%s2930_s23 + $0x50] sm:$0xff]  }
 0x1c9   : > { %v2402_v54 = vunpack.c.l.bf16 %v2433_v5  ;;  %v2403_v11 = vunpack.c.h.bf16 %v2433_v5 }
 0x1ca   : > { %2035 = vst [vmem:[%s3645_s20 + $0x38] sm:$0xff] %v2003_v20  ;;  %1916 = vmatmul.bf16.gmra.mxu3 %v1772_v17 }
 0x1cd   : > { %v1872_v29 = vpop.f32.mrf.mxu1 }
 0x1ce   : > { %v1873_v53 = vadd.f32 %v3618_v12, %v1872_v29 }
 0x1d0   : > { %v2004_v7 = vadd.f32 %v2378_v25, %v1873_v53  ;;  %v2406_v25 = vunpack.c.l.bf16 %v2434_v45 }
 0x1d2   : > { %2036 = vst [vmem:[%s3645_s20 + $0x40] sm:$0xff] %v2004_v7 }
 0x1d5   : > { %v1874_v37 = vpop.f32.mrf.mxu1 }
 0x1d6   : > { %v1875_v60 = vadd.f32 %v3618_v12, %v1874_v37 }
 0x1d8   : > { %v2005_v30 = vadd.f32 %v2379_v16, %v1875_v60  ;;  %v2407_v16 = vunpack.c.h.bf16 %v2434_v45 }
 0x1da   : > { %2037 = vst [vmem:[%s3645_s20 + $0x48] sm:$0xff] %v2005_v30  ;;  %1921 = vmatmul.bf16.gmra.mxu3 %v1773_v52 }
 0x1dd   : > { %v1877_v36 = vpop.f32.mrf.mxu1 }
 0x1de   : > { %v1878_v10 = vadd.f32 %v3618_v12, %v1877_v36 }
 0x1e0   : > { %v2006_v1 = vadd.f32 %v2382_v50, %v1878_v10  ;;  %v2410_v50 = vunpack.c.l.bf16 %v2435_v23 }
 0x1e2   : > { %2038 = vst [vmem:[%s3645_s20 + $0x50] sm:$0xff] %v2006_v1 }
 0x1e5   : > { %v1879_v15 = vpop.f32.mrf.mxu1 }
 0x1e6   : > { %v1880_v40 = vadd.f32 %v3618_v12, %v1879_v15 }
 0x1e8   : > { %v2007_v55 = vadd.f32 %v2383_v31, %v1880_v40  ;;  %v2411_v31 = vunpack.c.h.bf16 %v2435_v23 }
 0x1ea   : > { %2039 = vst [vmem:[%s3645_s20 + $0x58] sm:$0xff] %v2007_v55  ;;  %1926 = vmatmul.bf16.gmra.mxu3 %v1774_v14 }
 0x1ed   : > { %v1882_v9 = vpop.f32.mrf.mxu1 }
 0x1ee   : > { %v1883_v41 = vadd.f32 %v3618_v12, %v1882_v9 }
 0x1f0   : > { %v2008_v51 = vadd.f32 %v2386_v57, %v1883_v41  ;;  %v2414_v57 = vunpack.c.l.bf16 %v2436_v6 }
 0x1f2   : > { %2040 = vst [vmem:[%s3645_s20 + $0x60] sm:$0xff] %v2008_v51 }
 0x1f5   : > { %v1884_v26 = vpop.f32.mrf.mxu1 }
 0x1f6   : > { %v1885_v48 = vadd.f32 %v3618_v12, %v1884_v26 }
 0x1f8   : > { %v2009_v34 = vadd.f32 %v2387_v44, %v1885_v48  ;;  %v2415_v44 = vunpack.c.h.bf16 %v2436_v6 }
 0x1fa   : > { %2041 = vst [vmem:[%s3645_s20 + $0x68] sm:$0xff] %v2009_v34 }
 0x1fd   : > { %v1887_v42 = vpop.f32.mrf.mxu1  ;;  %v1892_v21 = vpop.f32.mrf.mxu3 }
 0x1fe   : > { %v1888_v13 = vadd.f32 %v3618_v12, %v1887_v42  ;;  %v1893_v39 = vadd.f32 %v3618_v12, %v1892_v21  ;;  %v2419_v21 = vunpack.c.h.bf16 %v2437_v62 }
 0x200   : > { %v2010_v0 = vadd.f32 %v2390_v24, %v1888_v13  ;;  %v2012_v52 = vadd.f32 %v2394_v3, %v1893_v39 }
 0x202   : > { %2042 = vst [vmem:[%s3645_s20 + $0x70] sm:$0xff] %v2010_v0 }
 0x203   : > { %2044 = vst [vmem:[%s3645_s20 + $0x80] sm:$0xff] %v2012_v52  ;;  %v2438_v52 = vld [vmem:[%s2930_s23 + $0x78] sm:$0xff]   ;;  %s2061_s23 = scalar_lea.sflag [#allocation5], %s2926_s15 }
 0x205   : > { %v1889_v56 = vpop.f32.mrf.mxu1  ;;  %v1894_v32 = vpop.f32.mrf.mxu3 }
 0x206   : > { %v1890_v4 = vadd.f32 %v3618_v12, %v1889_v56  ;;  %v1895_v58 = vadd.f32 %v3618_v12, %v1894_v32 }
 0x208   : > { %v2011_v59 = vadd.f32 %v2391_v61, %v1890_v4  ;;  %v2013_v27 = vadd.f32 %v2395_v63, %v1895_v58  ;;  %v2422_v61 = vunpack.c.l.bf16 %v2438_v52  ;;  %v2423_v4 = vunpack.c.h.bf16 %v2438_v52 }
 0x20a   : > { %2043 = vst [vmem:[%s3645_s20 + $0x78] sm:$0xff] %v2011_v59 }
 0x20b   : > { %2045 = vst [vmem:[%s3645_s20 + $0x88] sm:$0xff] %v2013_v27 }
 0x20d   : > { %v1897_v46 = vpop.f32.mrf.mxu3 }
 0x20e   : > { %v1898_v2 = vadd.f32 %v3618_v12, %v1897_v46 }
 0x210   : > { %v2014_v28 = vadd.f32 %v2398_v43, %v1898_v2 }
 0x212   : > { %2046 = vst [vmem:[%s3645_s20 + $0x90] sm:$0xff] %v2014_v28 }
 0x215   : > { %v1899_v22 = vpop.f32.mrf.mxu3 }
 0x216   : > { %v1900_v33 = vadd.f32 %v3618_v12, %v1899_v22 }
 0x218   : > { %v2015_v38 = vadd.f32 %v2399_v8, %v1900_v33 }
 0x21a   : > { %2047 = vst [vmem:[%s3645_s20 + $0x98] sm:$0xff] %v2015_v38 }
 0x21d   : > { %v1902_v19 = vpop.f32.mrf.mxu3 }
 0x21e   : > { %v1903_v35 = vadd.f32 %v3618_v12, %v1902_v19 }
 0x220   : > { %v2016_v49 = vadd.f32 %v2402_v54, %v1903_v35 }
 0x222   : > { %2048 = vst [vmem:[%s3645_s20 + $0xa0] sm:$0xff] %v2016_v49 }
 0x225   : > { %v1904_v14 = vpop.f32.mrf.mxu3 }
 0x226   : > { %v1905_v20 = vadd.f32 %v3618_v12, %v1904_v14 }
 0x228   : > { %v2017_v17 = vadd.f32 %v2403_v11, %v1905_v20 }
 0x22a   : > { %2049 = vst [vmem:[%s3645_s20 + $0xa8] sm:$0xff] %v2017_v17 }
 0x22d   : > { %v1907_v29 = vpop.f32.mrf.mxu3 }
 0x22e   : > { %v1908_v53 = vadd.f32 %v3618_v12, %v1907_v29 }
 0x230   : > { %v2018_v7 = vadd.f32 %v2406_v25, %v1908_v53 }
 0x232   : > { %2050 = vst [vmem:[%s3645_s20 + $0xb0] sm:$0xff] %v2018_v7 }
 0x235   : > { %v1909_v37 = vpop.f32.mrf.mxu3 }
 0x236   : > { %v1910_v60 = vadd.f32 %v3618_v12, %v1909_v37 }
 0x238   : > { %v2019_v30 = vadd.f32 %v2407_v16, %v1910_v60 }
 0x23a   : > { %2051 = vst [vmem:[%s3645_s20 + $0xb8] sm:$0xff] %v2019_v30 }
 0x23d   : > { %v1912_v36 = vpop.f32.mrf.mxu3 }
 0x23e   : > { %v1913_v10 = vadd.f32 %v3618_v12, %v1912_v36 }
 0x240   : > { %v2020_v1 = vadd.f32 %v2410_v50, %v1913_v10 }
 0x242   : > { %2052 = vst [vmem:[%s3645_s20 + $0xc0] sm:$0xff] %v2020_v1 }
 0x245   : > { %v1914_v15 = vpop.f32.mrf.mxu3 }
 0x246   : > { %v1915_v40 = vadd.f32 %v3618_v12, %v1914_v15 }
 0x248   : > { %v2021_v55 = vadd.f32 %v2411_v31, %v1915_v40 }
 0x24a   : > { %2053 = vst [vmem:[%s3645_s20 + $0xc8] sm:$0xff] %v2021_v55 }
 0x24d   : > { %v1917_v9 = vpop.f32.mrf.mxu3 }
 0x24e   : > { %v1918_v41 = vadd.f32 %v3618_v12, %v1917_v9 }
 0x250   : > { %v2022_v51 = vadd.f32 %v2414_v57, %v1918_v41 }
 0x252   : > { %2054 = vst [vmem:[%s3645_s20 + $0xd0] sm:$0xff] %v2022_v51 }
 0x255   : > { %v1919_v26 = vpop.f32.mrf.mxu3 }
 0x256   : > { %v1920_v48 = vadd.f32 %v3618_v12, %v1919_v26 }
 0x258   : > { %v2023_v34 = vadd.f32 %v2415_v44, %v1920_v48 }
 0x25a   : > { %2055 = vst [vmem:[%s3645_s20 + $0xd8] sm:$0xff] %v2023_v34 }
 0x25d   : > { %v1922_v24 = vpop.f32.mrf.mxu3 }
 0x25e   : > { %v1923_v3 = vadd.f32 %v3618_v12, %v1922_v24 }
 0x260   : > { %v2024_v42 = vadd.f32 %v2418_v18, %v1923_v3 }
 0x262   : > { %2056 = vst [vmem:[%s3645_s20 + $0xe0] sm:$0xff] %v2024_v42 }
 0x265   : > { %v1924_v13 = vpop.f32.mrf.mxu3 }
 0x266   : > { %v1925_v39 = vadd.f32 %v3618_v12, %v1924_v13 }
 0x268   : > { %v2025_v0 = vadd.f32 %v2419_v21, %v1925_v39 }
 0x26a   : > { %2057 = vst [vmem:[%s3645_s20 + $0xe8] sm:$0xff] %v2025_v0 }
 0x26d   : > { %v1927_v63 = vpop.f32.mrf.mxu3 }
 0x26e   : > { %v1928_v56 = vadd.f32 %v3618_v12, %v1927_v63 }
 0x270   : > { %v2026_v32 = vadd.f32 %v2422_v61, %v1928_v56 }
 0x272   : > { %2058 = vst [vmem:[%s3645_s20 + $0xf0] sm:$0xff] %v2026_v32 }
 0x275   : > { %v1929_v58 = vpop.f32.mrf.mxu3 }
 0x276   : > { %v1930_v59 = vadd.f32 %v3618_v12, %v1929_v58 }
 0x278   : > { %v2027_v27 = vadd.f32 %v2423_v4, %v1930_v59 }
 0x27a   : > { %2059 = vst [vmem:[%s3645_s20 + $0xf8] sm:$0xff] %v2027_v27 }
 0x27b   : > { %2708 = shalt.err (!%p2705_p10)
}
 0x27c   : > { %s2763_s15 = smov 128   ;;  %s2764_s20 = smov 8  }
 0x27d   : > { %2469 = dma.vmem_to_hbm [thread:$0]  (%p2896_p3), %s2074_s10, 4096, %s2076_s14, %s2061_s23, %s2763_s15, %s2763_s15, %s2764_s20  }
 0x27e PF: > { %s2090_s1 = sand.u32 1, %s2743_s24   ;;  %p3944_p12 = scmp.ge.s32.totalorder %s2755_s27, 2 }
 0x27f   : > { %s2091_s30 = scalar_lea.sflag [#allocation5], %s2090_s1 }
 0x280   : > { %p2486_p13 = pnand %p3944_p12, %p2840_p6 }
 0x282   : > { %p2487_p0 = pneg %p2486_p13 }
 0x284   : > { %2738 = dma.done.wait (%p2487_p0), %s2091_s30, 4096  }
 0x285   : > { %2740 = vsyncadd (%p2487_p0), %s2091_s30, 4294963200  ;;  %p22_p5 = scmp.ge.s32.totalorder %s2878_s13, 4   ;;  %s3945_s24 = smov %s2747_s25 }
 0x286   : > { %s3946_s25 = smov %s2751_s26  ;;  %s3947_s26 = smov %s2892_s17 }
 0x287   : > { %s3948_s27 = smov %s2878_s13  ;;  %24 = sbr.rel (!%p22_p5) target bundleno = 9 (0x9), region = 110 }
 0x28c   :  { %2097 = vsyncpa [#allocation4], 1 }
 0x28d   :  { %2099 = vsyncpa [#allocation4 + $0x1], 1 }
 0x28e   :  { %2100 = vsyncpa [#allocation7], 1 }
 0x28f   :  { %2101 = vsyncpa [#allocation10], 1 }
 0x290   :  { %2102 = vsyncpa [#allocation5], 1 }
 0x291   :  { %2104 = vsyncpa [#allocation5 + $0x1], 1 }

</bundles_post_ra>
